<compile_context>
chip_gen: v5e
topology: v5e:2x2
jax: 0.10.0
libtpu: 0.0.40
codegen_flags: <defaults>
</compile_context>

<pallas_src>
import jax
import jax.numpy as jnp
from jax import lax
from jax.experimental import pallas as pl
from jax.experimental.pallas import tpu as pltpu


# ---------------------------------------------------------------------------
# Band-size heuristic: output rows per band.  Must divide Ho; the band's
# flattened pixel count must be a multiple of 128 (lane-dense output blocks
# and legal Mosaic tiling) unless the band covers the whole image.
# ---------------------------------------------------------------------------
def _pick_band_rows(Ho, Wo, max_band_pixels=2048):
    divs = [d for d in range(1, Ho + 1) if Ho % d == 0]
    legal = [d for d in divs if (d * Wo) % 128 == 0 or d == Ho]
    # Prefer: fits VMEM pixel budget, >= 2 bands (megacore / pipelining),
    # lane-dense band output.  Then relax.
    for d in sorted(legal, reverse=True):
        if d * Wo <= max_band_pixels and (d < Ho or Ho == 1) and (d * Wo) % 128 == 0:
            return d
    for d in sorted(legal, reverse=True):
        if d * Wo <= max_band_pixels:
            return d
    return Ho


# ---------------------------------------------------------------------------
# Fused InvertedResidual forward (Pallas).
# ---------------------------------------------------------------------------
def inverted_residual_pallas(x_nchw, fp, *, stride, expand_ratio, inp, oup,
                             band_rows=None):
    N, Cin, H, W = x_nchw.shape
    assert Cin == inp and stride in (1, 2)
    has_expand = expand_ratio != 1
    use_res = (stride == 1 and inp == oup)
    Chid = fp["wdw"].shape[-1]
    Ho = (H - 1) // stride + 1
    Wo = (W - 1) // stride + 1

    TRo = band_rows if band_rows is not None else _pick_band_rows(Ho, Wo)
    assert Ho % TRo == 0, "band_rows must divide the output height"
    NB = Ho // TRo                       # number of output-row bands per image
    Rcore = (TRo - 1) * stride + 1       # input rows that are always in-bounds
    Rin = Rcore + 2                      # + one halo row above and below
    Wp = W + 2                           # zero-padded width (inside VMEM only)

    x_nhwc = jnp.transpose(x_nchw, (0, 2, 3, 1))    # channels-last for compute
    w3cm = jnp.transpose(fp["w3"], (1, 0))          # (Cout, Chid) channel-major
    b3cm = fp["b3"].reshape(oup, 1)

    args = [x_nhwc]
    in_specs = [pl.BlockSpec((None, H, W, Cin), lambda n, r: (n, 0, 0, 0))]
    if has_expand:
        args += [fp["w1"], fp["b1"]]
        in_specs += [pl.BlockSpec((Cin, Chid), lambda n, r: (0, 0)),
                     pl.BlockSpec((1, Chid), lambda n, r: (0, 0))]
    args += [fp["wdw"], fp["b2"], w3cm, b3cm]
    in_specs += [pl.BlockSpec((3, 3, Chid), lambda n, r: (0, 0, 0)),
                 pl.BlockSpec((1, Chid), lambda n, r: (0, 0)),
                 pl.BlockSpec((oup, Chid), lambda n, r: (0, 0)),
                 pl.BlockSpec((oup, 1), lambda n, r: (0, 0))]
    if use_res:
        # NCHW flattened (free reshape) -> residual is already channel-major.
        args.append(x_nchw.reshape(N, Cin, H * W))
        in_specs.append(
            pl.BlockSpec((None, Cin, TRo * Wo), lambda n, r: (n, 0, r)))

    def kernel(*refs):
        it = iter(refs)
        x_ref = next(it)                             # (H, W, Cin), resident
        w1_ref = b1_ref = None
        if has_expand:
            w1_ref, b1_ref = next(it), next(it)
        wdw_ref, b2_ref = next(it), next(it)
        w3_ref, b3_ref = next(it), next(it)
        res_ref = next(it) if use_res else None
        o_ref = next(it)                             # (Cout, TRo*Wo)
        hbuf = next(it)                              # (Rin, Wp, Chid) scratch

        r = pl.program_id(1)
        row0 = r * (TRo * stride)        # first always-valid input row of band

        # Zero only the parts of the padded scratch that act as conv padding.
        zcol = jnp.zeros((Rin, 1, Chid), jnp.float32)
        hbuf[:, 0:1, :] = zcol
        hbuf[:, Wp - 1:Wp, :] = zcol
        zrow = jnp.zeros((1, Wp, Chid), jnp.float32)
        hbuf[0:1, :, :] = zrow
        hbuf[Rin - 1:Rin, :, :] = zrow

        def expand(rows):                # (k, W, Cin) -> (k, W, Chid)
            k = rows.shape[0]
            flat = rows.reshape(k * W, Cin)
            if has_expand:
                h = jnp.dot(flat, w1_ref[...],
                            preferred_element_type=jnp.float32)
                h = jnp.clip(h + b1_ref[...], 0.0, 6.0)
            else:
                h = flat.astype(jnp.float32)
            return h.reshape(k, W, Chid)

        # 1x1 expand conv + BN + ReLU6, written straight into the padded
        # VMEM hidden buffer (the hidden activation never touches HBM).
        hbuf[1:1 + Rcore, 1:1 + W, :] = expand(x_ref[pl.ds(row0, Rcore), :, :])

        @pl.when(row0 > 0)               # top halo row (zero pad at image top)
        def _():
            hbuf[0:1, 1:1 + W, :] = expand(x_ref[pl.ds(row0 - 1, 1), :, :])

        @pl.when(row0 + Rcore < H)       # bottom halo row (zero pad at bottom)
        def _():
            hbuf[Rin - 1:Rin, 1:1 + W, :] = expand(
                x_ref[pl.ds(row0 + Rcore, 1), :, :])

        # 3x3 depthwise conv + BN + ReLU6 on the VMEM-resident hidden band.
        hp = hbuf[...]
        wdw = wdw_ref[...]
        acc = jnp.zeros((TRo, Wo, Chid), jnp.float32)
        for kh in range(3):
            for kw in range(3):
                win = lax.slice(
                    hp, (kh, kw, 0),
                    (kh + (TRo - 1) * stride + 1,
                     kw + (Wo - 1) * stride + 1, Chid),
                    (stride, stride, 1))
                acc = acc + win * wdw[kh:kh + 1, kw:kw + 1, :]
        acc = jnp.clip(acc + b2_ref[...].reshape(1, 1, Chid), 0.0, 6.0)

        # 1x1 project conv + BN, computed channel-major so the HBM store is
        # lane-dense and already NCHW-ordered; optional residual add.
        h2 = acc.reshape(TRo * Wo, Chid)
        out = lax.dot_general(w3_ref[...], h2,
                              dimension_numbers=(((1,), (1,)), ((), ())),
                              preferred_element_type=jnp.float32)
        out = out + b3_ref[...]
        if use_res:
            out = out + res_ref[...].astype(jnp.float32)
        o_ref[...] = out.astype(o_ref.dtype)

    out = pl.pallas_call(
        kernel,
        out_shape=jax.ShapeDtypeStruct((N, oup, Ho * Wo), x_nchw.dtype),
        grid_spec=pltpu.PrefetchScalarGridSpec(
            num_scalar_prefetch=0,
            grid=(N, NB),
            in_specs=in_specs,
            out_specs=pl.BlockSpec((None, oup, TRo * Wo),
                                   lambda n, r: (n, 0, r)),
            scratch_shapes=[pltpu.VMEM((Rin, Wp, Chid), jnp.float32)]),
        compiler_params=pltpu.CompilerParams(
            dimension_semantics=("parallel", "parallel"),
            vmem_limit_bytes=48 * 1024 * 1024),
    )(*args)
    return out.reshape(N, oup, Ho, Wo)   # already NCHW: no output transpose


# ---------------------------------------------------------------------------
# Parameter setup (deterministic) + BN folding (inference semantics).
# ---------------------------------------------------------------------------
def fold_bn(gamma, beta, mean, var, eps=1e-5):
    scale = gamma / jnp.sqrt(var + eps)
    bias = beta - mean * scale
    return scale, bias


def init_params(key, inp, oup, expand_ratio):
    hidden = int(round(inp * expand_ratio))
    ks = jax.random.split(key, 6)

    def bn(k, c):
        k1, k2, k3, k4 = jax.random.split(k, 4)
        gamma = jax.random.uniform(k1, (c,), minval=0.5, maxval=1.5)
        beta = 0.1 * jax.random.normal(k2, (c,))
        mean = 0.1 * jax.random.normal(k3, (c,))
        var = jax.random.uniform(k4, (c,), minval=0.5, maxval=1.5)
        return gamma, beta, mean, var

    p = {}
    # 1x1 expand conv (PyTorch (hidden, inp, 1, 1)) -> (inp, hidden)
    p["w1"] = 0.1 * jax.random.normal(ks[0], (inp, hidden), jnp.float32)
    p["bn1"] = bn(ks[1], hidden)
    # depthwise 3x3 conv (PyTorch (hidden, 1, 3, 3)) -> (3, 3, hidden)
    p["wdw"] = 0.1 * jax.random.normal(ks[2], (3, 3, hidden), jnp.float32)
    p["bn2"] = bn(ks[3], hidden)
    # 1x1 project conv (PyTorch (oup, hidden, 1, 1)) -> (hidden, oup)
    p["w3"] = 0.1 * jax.random.normal(ks[4], (hidden, oup), jnp.float32)
    p["bn3"] = bn(ks[5], oup)
    return p, hidden


def fold_params(p):
    s1, b1 = fold_bn(*p["bn1"])
    s2, b2 = fold_bn(*p["bn2"])
    s3, b3 = fold_bn(*p["bn3"])
    return {
        "w1": p["w1"] * s1[None, :], "b1": b1[None, :],
        "wdw": p["wdw"] * s2[None, None, :], "b2": b2[None, :],
        "w3": p["w3"] * s3[None, :], "b3": b3,
    }


# ---------------------------------------------------------------------------
# Pure-JAX reference (same folded-BN inference semantics).
# ---------------------------------------------------------------------------
def inverted_residual_ref(x_nchw, fp, *, stride, expand_ratio, inp, oup):
    use_res = (stride == 1 and inp == oup)
    x = jnp.transpose(x_nchw, (0, 2, 3, 1))
    h = x
    if expand_ratio != 1:
        h = jnp.clip(jnp.einsum("nhwc,cd->nhwd", h, fp["w1"]) + fp["b1"][0],
                     0.0, 6.0)
    C = h.shape[-1]
    dw = lax.conv_general_dilated(
        h, fp["wdw"].reshape(3, 3, 1, C),
        window_strides=(stride, stride), padding=((1, 1), (1, 1)),
        dimension_numbers=("NHWC", "HWIO", "NHWC"), feature_group_count=C)
    h = jnp.clip(dw + fp["b2"][0], 0.0, 6.0)
    out = jnp.einsum("nhwc,cd->nhwd", h, fp["w3"]) + fp["b3"]
    if use_res:
        out = out + x
    return jnp.transpose(out, (0, 3, 1, 2))


if __name__ == "__main__":
    # MobileNetV2 InvertedResidual: inp=oup=8, stride=1, expand_ratio=4
    # (stride==1 and inp==oup -> residual connection is exercised).
    N, INP, OUP, H, W = 2, 8, 8, 16, 16
    STRIDE, EXPAND = 1, 4

    key = jax.random.PRNGKey(0)
    kx, kp = jax.random.split(key)
    x = jax.random.normal(kx, (N, INP, H, W), jnp.float32)

    params, hidden = init_params(kp, INP, OUP, EXPAND)
    fp = fold_params(params)

    out = inverted_residual_pallas(
        x, fp, stride=STRIDE, expand_ratio=EXPAND, inp=INP, oup=OUP)
    out = jax.block_until_ready(out)

    ref = inverted_residual_ref(
        x, fp, stride=STRIDE, expand_ratio=EXPAND, inp=INP, oup=OUP)
    assert out.shape == (N, OUP, H, W)
    assert jnp.allclose(out, ref, atol=2e-4, rtol=2e-4), "mismatch vs JAX reference"

    print("KERNEL_OK")
</pallas_src>

<mosaic_0001>
module attributes {stable_mosaic.version = 11 : i64} {
  func.func @kernel(%arg0: i32, %arg1: i32, %arg2: memref<1x16x16x8xf32, #tpu.memory_space<vmem>>, %arg3: memref<8x32xf32, #tpu.memory_space<vmem>>, %arg4: memref<1x32xf32, #tpu.memory_space<vmem>>, %arg5: memref<3x3x32xf32, #tpu.memory_space<vmem>>, %arg6: memref<1x32xf32, #tpu.memory_space<vmem>>, %arg7: memref<8x32xf32, #tpu.memory_space<vmem>>, %arg8: memref<8x1xf32, #tpu.memory_space<vmem>>, %arg9: memref<1x8x128xf32, #tpu.memory_space<vmem>>, %arg10: memref<1x8x128xf32, #tpu.memory_space<vmem>>, %arg11: memref<10x18x32xf32, #tpu.memory_space<vmem>>) attributes {dimension_semantics = [#tpu.dimension_semantics<parallel>, #tpu.dimension_semantics<parallel>], iteration_bounds = array<i64: 2, 2>, scalar_prefetch = 0 : i64, scratch_operands = 1 : i64, tpu.core_type = #tpu.core_type<tc>, window_params = [{transform_indices = @transform_0, window_bounds = array<i64: 1, 16, 16, 8>}, {pipeline_mode = #tpu.pipeline_mode<synchronous>, transform_indices = @transform_1, window_bounds = array<i64: 8, 32>}, {pipeline_mode = #tpu.pipeline_mode<synchronous>, transform_indices = @transform_2, window_bounds = array<i64: 1, 32>}, {pipeline_mode = #tpu.pipeline_mode<synchronous>, transform_indices = @transform_3, window_bounds = array<i64: 3, 3, 32>}, {pipeline_mode = #tpu.pipeline_mode<synchronous>, transform_indices = @transform_4, window_bounds = array<i64: 1, 32>}, {pipeline_mode = #tpu.pipeline_mode<synchronous>, transform_indices = @transform_5, window_bounds = array<i64: 8, 32>}, {pipeline_mode = #tpu.pipeline_mode<synchronous>, transform_indices = @transform_6, window_bounds = array<i64: 8, 1>}, {transform_indices = @transform_7, window_bounds = array<i64: 1, 8, 128>}, {transform_indices = @transform_8, window_bounds = array<i64: 1, 8, 128>}]} {
    %c8_i32 = arith.constant 8 : i32
    %0 = arith.muli %arg1, %c8_i32 : i32
    %cst = arith.constant 0.000000e+00 : f32
    %1 = vector.broadcast %cst : f32 to vector<10x1x32xf32>
    %c0 = arith.constant 0 : index
    %c0_0 = arith.constant 0 : index
    %c0_1 = arith.constant 0 : index
    %2 = vector.load %arg11[%c0, %c0_0, %c0_1] : memref<10x18x32xf32, #tpu.memory_space<vmem>>, vector<10x1x32xf32>
    tpu.vector_store %arg11[%c0, %c0_0, %c0_1], %1 {strides = array<i32>} : memref<10x18x32xf32, #tpu.memory_space<vmem>>, vector<10x1x32xf32>,
    %c0_2 = arith.constant 0 : index
    %c17 = arith.constant 17 : index
    %c0_3 = arith.constant 0 : index
    %3 = vector.load %arg11[%c0_2, %c17, %c0_3] : memref<10x18x32xf32, #tpu.memory_space<vmem>>, vector<10x1x32xf32>
    tpu.vector_store %arg11[%c0_2, %c17, %c0_3], %1 {strides = array<i32>} : memref<10x18x32xf32, #tpu.memory_space<vmem>>, vector<10x1x32xf32>,
    %cst_4 = arith.constant 0.000000e+00 : f32
    %4 = vector.broadcast %cst_4 : f32 to vector<1x18x32xf32>
    %c0_5 = arith.constant 0 : index
    %c0_6 = arith.constant 0 : index
    %c0_7 = arith.constant 0 : index
    %5 = vector.load %arg11[%c0_5, %c0_6, %c0_7] : memref<10x18x32xf32, #tpu.memory_space<vmem>>, vector<1x18x32xf32>
    tpu.vector_store %arg11[%c0_5, %c0_6, %c0_7], %4 {strides = array<i32>} : memref<10x18x32xf32, #tpu.memory_space<vmem>>, vector<1x18x32xf32>,
    %c9 = arith.constant 9 : index
    %c0_8 = arith.constant 0 : index
    %c0_9 = arith.constant 0 : index
    %6 = vector.load %arg11[%c9, %c0_8, %c0_9] : memref<10x18x32xf32, #tpu.memory_space<vmem>>, vector<1x18x32xf32>
    tpu.vector_store %arg11[%c9, %c0_8, %c0_9], %4 {strides = array<i32>} : memref<10x18x32xf32, #tpu.memory_space<vmem>>, vector<1x18x32xf32>,
    %c0_10 = arith.constant 0 : index
    %7 = arith.index_cast %0 : i32 to index
    %c0_11 = arith.constant 0 : index
    %c0_12 = arith.constant 0 : index
    %8 = vector.load %arg2[%c0_10, %7, %c0_11, %c0_12] : memref<1x16x16x8xf32, #tpu.memory_space<vmem>>, vector<1x8x16x8xf32>
    %9 = vector.shape_cast %8 : vector<1x8x16x8xf32> to vector<8x16x8xf32>
    %10 = vector.shape_cast %9 : vector<8x16x8xf32> to vector<128x8xf32>
    %c0_13 = arith.constant 0 : index
    %c0_14 = arith.constant 0 : index
    %11 = vector.load %arg3[%c0_13, %c0_14] : memref<8x32xf32, #tpu.memory_space<vmem>>, vector<8x32xf32>
    %cst_15 = arith.constant dense<0.000000e+00> : vector<128x32xf32>
    %12 = tpu.matmul %10, %11, %cst_15 {dimension_numbers = #tpu.dot_dimension_numbers<[1], [0], [0], [1], [0, 0, 1, 1], [], []>} : vector<128x8xf32>, vector<8x32xf32>, vector<128x32xf32> -> vector<128x32xf32>
    %c0_16 = arith.constant 0 : index
    %c0_17 = arith.constant 0 : index
    %13 = vector.load %arg4[%c0_16, %c0_17] : memref<1x32xf32, #tpu.memory_space<vmem>>, vector<1x32xf32>
    %14 = vector.broadcast %13 : vector<1x32xf32> to vector<128x32xf32>
    %15 = arith.addf %12, %14 : vector<128x32xf32>
    %cst_18 = arith.constant 0.000000e+00 : f32
    %cst_19 = arith.constant 6.000000e+00 : f32
    %16 = vector.broadcast %cst_18 : f32 to vector<128x32xf32>
    %17 = arith.maximumf %16, %15 : vector<128x32xf32>
    %18 = vector.broadcast %cst_19 : f32 to vector<128x32xf32>
    %19 = arith.minimumf %18, %17 : vector<128x32xf32>
    %20 = vector.shape_cast %19 : vector<128x32xf32> to vector<8x16x32xf32>
    %c1 = arith.constant 1 : index
    %c1_20 = arith.constant 1 : index
    %c0_21 = arith.constant 0 : index
    %21 = vector.load %arg11[%c1, %c1_20, %c0_21] : memref<10x18x32xf32, #tpu.memory_space<vmem>>, vector<8x16x32xf32>
    tpu.vector_store %arg11[%c1, %c1_20, %c0_21], %20 {strides = array<i32>} : memref<10x18x32xf32, #tpu.memory_space<vmem>>, vector<8x16x32xf32>,
    %c0_i32 = arith.constant 0 : i32
    %22 = arith.cmpi sgt, %0, %c0_i32 : i32
    %23 = arith.extui %22 : i1 to i32
    %c0_i32_22 = arith.constant 0 : i32
    %24 = arith.cmpi ne, %23, %c0_i32_22 : i32
    scf.if %24 {
      %c1_i32 = arith.constant 1 : i32
      %97 = arith.subi %0, %c1_i32 : i32
      %c0_47 = arith.constant 0 : index
      %98 = arith.index_cast %97 : i32 to index
      %c0_48 = arith.constant 0 : index
      %c0_49 = arith.constant 0 : index
      %99 = vector.load %arg2[%c0_47, %98, %c0_48, %c0_49] : memref<1x16x16x8xf32, #tpu.memory_space<vmem>>, vector<1x1x16x8xf32>
      %100 = vector.shape_cast %99 : vector<1x1x16x8xf32> to vector<1x16x8xf32>
      %101 = vector.shape_cast %100 : vector<1x16x8xf32> to vector<16x8xf32>
      %c0_50 = arith.constant 0 : index
      %c0_51 = arith.constant 0 : index
      %102 = vector.load %arg3[%c0_50, %c0_51] : memref<8x32xf32, #tpu.memory_space<vmem>>, vector<8x32xf32>
      %cst_52 = arith.constant dense<0.000000e+00> : vector<16x32xf32>
      %103 = tpu.matmul %101, %102, %cst_52 {dimension_numbers = #tpu.dot_dimension_numbers<[1], [0], [0], [1], [0, 0, 1, 1], [], []>} : vector<16x8xf32>, vector<8x32xf32>, vector<16x32xf32> -> vector<16x32xf32>
      %c0_53 = arith.constant 0 : index
      %c0_54 = arith.constant 0 : index
      %104 = vector.load %arg4[%c0_53, %c0_54] : memref<1x32xf32, #tpu.memory_space<vmem>>, vector<1x32xf32>
      %105 = vector.broadcast %104 : vector<1x32xf32> to vector<16x32xf32>
      %106 = arith.addf %103, %105 : vector<16x32xf32>
      %cst_55 = arith.constant 0.000000e+00 : f32
      %cst_56 = arith.constant 6.000000e+00 : f32
      %107 = vector.broadcast %cst_55 : f32 to vector<16x32xf32>
      %108 = arith.maximumf %107, %106 : vector<16x32xf32>
      %109 = vector.broadcast %cst_56 : f32 to vector<16x32xf32>
      %110 = arith.minimumf %109, %108 : vector<16x32xf32>
      %111 = vector.shape_cast %110 : vector<16x32xf32> to vector<1x16x32xf32>
      %c0_57 = arith.constant 0 : index
      %c1_58 = arith.constant 1 : index
      %c0_59 = arith.constant 0 : index
      %112 = vector.load %arg11[%c0_57, %c1_58, %c0_59] : memref<10x18x32xf32, #tpu.memory_space<vmem>>, vector<1x16x32xf32>
      tpu.vector_store %arg11[%c0_57, %c1_58, %c0_59], %111 {strides = array<i32>} : memref<10x18x32xf32, #tpu.memory_space<vmem>>, vector<1x16x32xf32>,
    } else {
    }
    %c8_i32_23 = arith.constant 8 : i32
    %25 = arith.addi %0, %c8_i32_23 : i32
    %c16_i32 = arith.constant 16 : i32
    %26 = arith.cmpi slt, %25, %c16_i32 : i32
    %27 = arith.extui %26 : i1 to i32
    %c0_i32_24 = arith.constant 0 : i32
    %28 = arith.cmpi ne, %27, %c0_i32_24 : i32
    scf.if %28 {
      %c8_i32_47 = arith.constant 8 : i32
      %97 = arith.addi %0, %c8_i32_47 : i32
      %c0_48 = arith.constant 0 : index
      %98 = arith.index_cast %97 : i32 to index
      %c0_49 = arith.constant 0 : index
      %c0_50 = arith.constant 0 : index
      %99 = vector.load %arg2[%c0_48, %98, %c0_49, %c0_50] : memref<1x16x16x8xf32, #tpu.memory_space<vmem>>, vector<1x1x16x8xf32>
      %100 = vector.shape_cast %99 : vector<1x1x16x8xf32> to vector<1x16x8xf32>
      %101 = vector.shape_cast %100 : vector<1x16x8xf32> to vector<16x8xf32>
      %c0_51 = arith.constant 0 : index
      %c0_52 = arith.constant 0 : index
      %102 = vector.load %arg3[%c0_51, %c0_52] : memref<8x32xf32, #tpu.memory_space<vmem>>, vector<8x32xf32>
      %cst_53 = arith.constant dense<0.000000e+00> : vector<16x32xf32>
      %103 = tpu.matmul %101, %102, %cst_53 {dimension_numbers = #tpu.dot_dimension_numbers<[1], [0], [0], [1], [0, 0, 1, 1], [], []>} : vector<16x8xf32>, vector<8x32xf32>, vector<16x32xf32> -> vector<16x32xf32>
      %c0_54 = arith.constant 0 : index
      %c0_55 = arith.constant 0 : index
      %104 = vector.load %arg4[%c0_54, %c0_55] : memref<1x32xf32, #tpu.memory_space<vmem>>, vector<1x32xf32>
      %105 = vector.broadcast %104 : vector<1x32xf32> to vector<16x32xf32>
      %106 = arith.addf %103, %105 : vector<16x32xf32>
      %cst_56 = arith.constant 0.000000e+00 : f32
      %cst_57 = arith.constant 6.000000e+00 : f32
      %107 = vector.broadcast %cst_56 : f32 to vector<16x32xf32>
      %108 = arith.maximumf %107, %106 : vector<16x32xf32>
      %109 = vector.broadcast %cst_57 : f32 to vector<16x32xf32>
      %110 = arith.minimumf %109, %108 : vector<16x32xf32>
      %111 = vector.shape_cast %110 : vector<16x32xf32> to vector<1x16x32xf32>
      %c9_58 = arith.constant 9 : index
      %c1_59 = arith.constant 1 : index
      %c0_60 = arith.constant 0 : index
      %112 = vector.load %arg11[%c9_58, %c1_59, %c0_60] : memref<10x18x32xf32, #tpu.memory_space<vmem>>, vector<1x16x32xf32>
      tpu.vector_store %arg11[%c9_58, %c1_59, %c0_60], %111 {strides = array<i32>} : memref<10x18x32xf32, #tpu.memory_space<vmem>>, vector<1x16x32xf32>,
    } else {
    }
    %c0_25 = arith.constant 0 : index
    %c0_26 = arith.constant 0 : index
    %c0_27 = arith.constant 0 : index
    %29 = vector.load %arg11[%c0_25, %c0_26, %c0_27] : memref<10x18x32xf32, #tpu.memory_space<vmem>>, vector<10x18x32xf32>
    %c0_28 = arith.constant 0 : index
    %c0_29 = arith.constant 0 : index
    %c0_30 = arith.constant 0 : index
    %30 = vector.load %arg5[%c0_28, %c0_29, %c0_30] : memref<3x3x32xf32, #tpu.memory_space<vmem>>, vector<3x3x32xf32>
    %cst_31 = arith.constant 0.000000e+00 : f32
    %31 = vector.broadcast %cst_31 : f32 to vector<8x16x32xf32>
    %32 = vector.extract_strided_slice %29 {offsets = [0, 0, 0], sizes = [8, 16, 32], strides = [1, 1, 1]} : vector<10x18x32xf32> to vector<8x16x32xf32>
    %33 = vector.extract_strided_slice %30 {offsets = [0, 0, 0], sizes = [1, 1, 32], strides = [1, 1, 1]} : vector<3x3x32xf32> to vector<1x1x32xf32>
    %34 = vector.broadcast %33 : vector<1x1x32xf32> to vector<8x16x32xf32>
    %35 = arith.mulf %32, %34 : vector<8x16x32xf32>
    %36 = arith.addf %31, %35 : vector<8x16x32xf32>
    %37 = vector.extract_strided_slice %29 {offsets = [0, 1, 0], sizes = [8, 16, 32], strides = [1, 1, 1]} : vector<10x18x32xf32> to vector<8x16x32xf32>
    %38 = vector.extract_strided_slice %30 {offsets = [0, 1, 0], sizes = [1, 1, 32], strides = [1, 1, 1]} : vector<3x3x32xf32> to vector<1x1x32xf32>
    %39 = vector.broadcast %38 : vector<1x1x32xf32> to vector<8x16x32xf32>
    %40 = arith.mulf %37, %39 : vector<8x16x32xf32>
    %41 = arith.addf %36, %40 : vector<8x16x32xf32>
    %42 = vector.extract_strided_slice %29 {offsets = [0, 2, 0], sizes = [8, 16, 32], strides = [1, 1, 1]} : vector<10x18x32xf32> to vector<8x16x32xf32>
    %43 = vector.extract_strided_slice %30 {offsets = [0, 2, 0], sizes = [1, 1, 32], strides = [1, 1, 1]} : vector<3x3x32xf32> to vector<1x1x32xf32>
    %44 = vector.broadcast %43 : vector<1x1x32xf32> to vector<8x16x32xf32>
    %45 = arith.mulf %42, %44 : vector<8x16x32xf32>
    %46 = arith.addf %41, %45 : vector<8x16x32xf32>
    %47 = vector.extract_strided_slice %29 {offsets = [1, 0, 0], sizes = [8, 16, 32], strides = [1, 1, 1]} : vector<10x18x32xf32> to vector<8x16x32xf32>
    %48 = vector.extract_strided_slice %30 {offsets = [1, 0, 0], sizes = [1, 1, 32], strides = [1, 1, 1]} : vector<3x3x32xf32> to vector<1x1x32xf32>
    %49 = vector.broadcast %48 : vector<1x1x32xf32> to vector<8x16x32xf32>
    %50 = arith.mulf %47, %49 : vector<8x16x32xf32>
    %51 = arith.addf %46, %50 : vector<8x16x32xf32>
    %52 = vector.extract_strided_slice %29 {offsets = [1, 1, 0], sizes = [8, 16, 32], strides = [1, 1, 1]} : vector<10x18x32xf32> to vector<8x16x32xf32>
    %53 = vector.extract_strided_slice %30 {offsets = [1, 1, 0], sizes = [1, 1, 32], strides = [1, 1, 1]} : vector<3x3x32xf32> to vector<1x1x32xf32>
    %54 = vector.broadcast %53 : vector<1x1x32xf32> to vector<8x16x32xf32>
    %55 = arith.mulf %52, %54 : vector<8x16x32xf32>
    %56 = arith.addf %51, %55 : vector<8x16x32xf32>
    %57 = vector.extract_strided_slice %29 {offsets = [1, 2, 0], sizes = [8, 16, 32], strides = [1, 1, 1]} : vector<10x18x32xf32> to vector<8x16x32xf32>
    %58 = vector.extract_strided_slice %30 {offsets = [1, 2, 0], sizes = [1, 1, 32], strides = [1, 1, 1]} : vector<3x3x32xf32> to vector<1x1x32xf32>
    %59 = vector.broadcast %58 : vector<1x1x32xf32> to vector<8x16x32xf32>
    %60 = arith.mulf %57, %59 : vector<8x16x32xf32>
    %61 = arith.addf %56, %60 : vector<8x16x32xf32>
    %62 = vector.extract_strided_slice %29 {offsets = [2, 0, 0], sizes = [8, 16, 32], strides = [1, 1, 1]} : vector<10x18x32xf32> to vector<8x16x32xf32>
    %63 = vector.extract_strided_slice %30 {offsets = [2, 0, 0], sizes = [1, 1, 32], strides = [1, 1, 1]} : vector<3x3x32xf32> to vector<1x1x32xf32>
    %64 = vector.broadcast %63 : vector<1x1x32xf32> to vector<8x16x32xf32>
    %65 = arith.mulf %62, %64 : vector<8x16x32xf32>
    %66 = arith.addf %61, %65 : vector<8x16x32xf32>
    %67 = vector.extract_strided_slice %29 {offsets = [2, 1, 0], sizes = [8, 16, 32], strides = [1, 1, 1]} : vector<10x18x32xf32> to vector<8x16x32xf32>
    %68 = vector.extract_strided_slice %30 {offsets = [2, 1, 0], sizes = [1, 1, 32], strides = [1, 1, 1]} : vector<3x3x32xf32> to vector<1x1x32xf32>
    %69 = vector.broadcast %68 : vector<1x1x32xf32> to vector<8x16x32xf32>
    %70 = arith.mulf %67, %69 : vector<8x16x32xf32>
    %71 = arith.addf %66, %70 : vector<8x16x32xf32>
    %72 = vector.extract_strided_slice %29 {offsets = [2, 2, 0], sizes = [8, 16, 32], strides = [1, 1, 1]} : vector<10x18x32xf32> to vector<8x16x32xf32>
    %73 = vector.extract_strided_slice %30 {offsets = [2, 2, 0], sizes = [1, 1, 32], strides = [1, 1, 1]} : vector<3x3x32xf32> to vector<1x1x32xf32>
    %74 = vector.broadcast %73 : vector<1x1x32xf32> to vector<8x16x32xf32>
    %75 = arith.mulf %72, %74 : vector<8x16x32xf32>
    %76 = arith.addf %71, %75 : vector<8x16x32xf32>
    %c0_32 = arith.constant 0 : index
    %c0_33 = arith.constant 0 : index
    %77 = vector.load %arg6[%c0_32, %c0_33] : memref<1x32xf32, #tpu.memory_space<vmem>>, vector<1x32xf32>
    %78 = vector.shape_cast %77 : vector<1x32xf32> to vector<1x1x32xf32>
    %79 = vector.broadcast %78 : vector<1x1x32xf32> to vector<8x16x32xf32>
    %80 = arith.addf %76, %79 : vector<8x16x32xf32>
    %cst_34 = arith.constant 0.000000e+00 : f32
    %cst_35 = arith.constant 6.000000e+00 : f32
    %81 = vector.broadcast %cst_34 : f32 to vector<8x16x32xf32>
    %82 = arith.maximumf %81, %80 : vector<8x16x32xf32>
    %83 = vector.broadcast %cst_35 : f32 to vector<8x16x32xf32>
    %84 = arith.minimumf %83, %82 : vector<8x16x32xf32>
    %85 = vector.shape_cast %84 : vector<8x16x32xf32> to vector<128x32xf32>
    %c0_36 = arith.constant 0 : index
    %c0_37 = arith.constant 0 : index
    %86 = vector.load %arg7[%c0_36, %c0_37] : memref<8x32xf32, #tpu.memory_space<vmem>>, vector<8x32xf32>
    %cst_38 = arith.constant dense<0.000000e+00> : vector<8x128xf32>
    %87 = tpu.matmul %86, %85, %cst_38 {dimension_numbers = #tpu.dot_dimension_numbers<[1], [1], [0], [0], [0, 0, 1, 0], [], []>} : vector<8x32xf32>, vector<128x32xf32>, vector<8x128xf32> -> vector<8x128xf32>
    %c0_39 = arith.constant 0 : index
    %c0_40 = arith.constant 0 : index
    %88 = vector.load %arg8[%c0_39, %c0_40] : memref<8x1xf32, #tpu.memory_space<vmem>>, vector<8x1xf32>
    %89 = vector.broadcast %88 : vector<8x1xf32> to vector<8x128xf32>
    %90 = arith.addf %87, %89 : vector<8x128xf32>
    %c0_41 = arith.constant 0 : index
    %c0_42 = arith.constant 0 : index
    %c0_43 = arith.constant 0 : index
    %91 = vector.load %arg9[%c0_41, %c0_42, %c0_43] : memref<1x8x128xf32, #tpu.memory_space<vmem>>, vector<1x8x128xf32>
    %92 = vector.shape_cast %91 : vector<1x8x128xf32> to vector<8x128xf32>
    %93 = arith.addf %90, %92 : vector<8x128xf32>
    %c0_44 = arith.constant 0 : index
    %c0_45 = arith.constant 0 : index
    %c0_46 = arith.constant 0 : index
    %94 = vector.load %arg10[%c0_44, %c0_45, %c0_46] : memref<1x8x128xf32, #tpu.memory_space<vmem>>, vector<1x8x128xf32>
    %95 = vector.shape_cast %94 : vector<1x8x128xf32> to vector<8x128xf32>
    %96 = vector.shape_cast %93 : vector<8x128xf32> to vector<1x8x128xf32>
    tpu.vector_store %arg10[%c0_44, %c0_45, %c0_46], %96 {strides = array<i32>} : memref<1x8x128xf32, #tpu.memory_space<vmem>>, vector<1x8x128xf32>,
    return
  }
  func.func @transform_0(%arg0: i32, %arg1: i32) -> (i32, i32, i32, i32) {
    %c0_i32 = arith.constant 0 : i32
    %c0_i32_0 = arith.constant 0 : i32
    %c0_i32_1 = arith.constant 0 : i32
    %c0_i32_2 = arith.constant 0 : i32
    return %arg0, %c0_i32, %c0_i32_0, %c0_i32_1 : i32, i32, i32, i32
  }
  func.func @transform_1(%arg0: i32, %arg1: i32) -> (i32, i32) {
    %c0_i32 = arith.constant 0 : i32
    %c0_i32_0 = arith.constant 0 : i32
    %c0_i32_1 = arith.constant 0 : i32
    return %c0_i32, %c0_i32_0 : i32, i32
  }
  func.func @transform_2(%arg0: i32, %arg1: i32) -> (i32, i32) {
    %c0_i32 = arith.constant 0 : i32
    %c0_i32_0 = arith.constant 0 : i32
    %c0_i32_1 = arith.constant 0 : i32
    return %c0_i32, %c0_i32_0 : i32, i32
  }
  func.func @transform_3(%arg0: i32, %arg1: i32) -> (i32, i32, i32) {
    %c0_i32 = arith.constant 0 : i32
    %c0_i32_0 = arith.constant 0 : i32
    %c0_i32_1 = arith.constant 0 : i32
    %c0_i32_2 = arith.constant 0 : i32
    return %c0_i32, %c0_i32_0, %c0_i32_1 : i32, i32, i32
  }
  func.func @transform_4(%arg0: i32, %arg1: i32) -> (i32, i32) {
    %c0_i32 = arith.constant 0 : i32
    %c0_i32_0 = arith.constant 0 : i32
    %c0_i32_1 = arith.constant 0 : i32
    return %c0_i32, %c0_i32_0 : i32, i32
  }
  func.func @transform_5(%arg0: i32, %arg1: i32) -> (i32, i32) {
    %c0_i32 = arith.constant 0 : i32
    %c0_i32_0 = arith.constant 0 : i32
    %c0_i32_1 = arith.constant 0 : i32
    return %c0_i32, %c0_i32_0 : i32, i32
  }
  func.func @transform_6(%arg0: i32, %arg1: i32) -> (i32, i32) {
    %c0_i32 = arith.constant 0 : i32
    %c0_i32_0 = arith.constant 0 : i32
    %c0_i32_1 = arith.constant 0 : i32
    return %c0_i32, %c0_i32_0 : i32, i32
  }
  func.func @transform_7(%arg0: i32, %arg1: i32) -> (i32, i32, i32) {
    %c0_i32 = arith.constant 0 : i32
    %c0_i32_0 = arith.constant 0 : i32
    return %arg0, %c0_i32, %arg1 : i32, i32, i32
  }
  func.func @transform_8(%arg0: i32, %arg1: i32) -> (i32, i32, i32) {
    %c0_i32 = arith.constant 0 : i32
    %c0_i32_0 = arith.constant 0 : i32
    return %arg0, %c0_i32, %arg1 : i32, i32, i32
  }
}

</mosaic_0001>

<bundles_post_ra>
// kernel: tpu_custom_call.1
= control target key start
LH: loop header
LB: loop body
LE: loop exit
PB: predicated region body
PF: predicated region fallthrough
CT: control target
= control target key end

     0   :  { %s3004_s0 = inlined_call_operand.vmem [shape: f32[2,16,16,8], index: 0, kind: input, shape index: {}]   ;;  %s3005_s1 = inlined_call_operand.vmem [shape: f32[8,32], index: 1, kind: input, shape index: {}]   ;;  %s3006_s2 = inlined_call_operand.vmem [shape: f32[1,32], index: 2, kind: input, shape index: {}]   ;;  %s3007_s3 = inlined_call_operand.vmem [shape: f32[3,3,32], index: 3, kind: input, shape index: {}]   ;;  %s3008_s4 = inlined_call_operand.vmem [shape: f32[1,32], index: 4, kind: input, shape index: {}]   ;;  %s3009_s5 = inlined_call_operand.vmem [shape: f32[8,32], index: 5, kind: input, shape index: {}]   ;;  %s3010_s6 = inlined_call_operand.vmem [shape: f32[8,1], index: 6, kind: input, shape index: {}]   ;;  %s3011_s7 = inlined_call_operand.vmem [shape: f32[2,8,256], index: 7, kind: input, shape index: {}]   ;;  %s3012_s8 = inlined_call_operand.hbm [shape: f32[2,8,256], index: 8, kind: output, shape index: {}]  }
   0x1   :  { %3015 = sst [smem:[#allocation8_spill]] %s3004_s0 }
   0x2   :  { %3016 = sst [smem:[#allocation9_spill]] %s3005_s1 }
   0x3   :  { %13 = vsyncpa [#allocation4], 0 }
   0x4   :  { %15 = vsyncpa [#allocation4 + $0x1], 0  ;;  %s2065_s27 = smov 0   ;;  %s2067_s28 = smov 0  }
   0x5   :  { %s2069_s29 = smov 0   ;;  %s2071_s30 = smov 0  }
   0x6   :  { %s2073_s9 = smov 0   ;;  %s2075_s10 = smov 0  }
   0x7   :  { %s2077_s11 = smov 0   ;;  %s2079_s12 = smov 0  }
   0x8 LB: > { %s1773_s13 = sadd.s32 4294967295, %s2016_s12   ;;  %s1774_s14 = sadd.s32 4294967294, %s2016_s12   ;;  %s2016_s12 = sphi %s2079_s12, %s21_s12   ;;  %s2012_s11 = sphi %s2077_s11, %s3037_s11   ;;  %s2008_s10 = sphi %s2075_s10, %s3036_s10   ;;  %s2004_s9 = sphi %s2073_s9, %s3035_s9   ;;  %s2000_s30 = sphi %s2071_s30, %s3034_s30   ;;  %s1996_s29 = sphi %s2069_s29, %s3033_s29   ;;  %s1992_s28 = sphi %s2067_s28, %s3032_s28   ;;  %s1988_s27 = sphi %s2065_s27, %s3031_s27  }
   0x9   : > { %s30_s15 = sadd.s32 1, %s2008_s10  ;;  %s33_s16 = sadd.s32 1, %s2012_s11 }
   0xa   : > { %p31_p0 = scmp.ge.s32.totalorder %s30_s15, 2  ;;  %p232_p1 = scmp.ne.s32.totalorder %s1996_s29, %s1992_s28 }
   0xb   : > { %p233_p2 = scmp.eq.s32.totalorder %s1773_s13, 3  ;;  %p238_p5 = scmp.ne.s32.totalorder %s1992_s28, %s1988_s27 }
   0xc   : > { %s3039_s15 = smov (%p31_p0, %s30_s15), 0  ;;  %s3041_s16 = smov (!%p31_p0, %s33_s16), %s2012_s11 }
   0xd   : > { %3017 = sst [smem:[#allocation6_spill]] %s3039_s15  ;;  %s218_s17 = ssub.s32 %s2008_s10, %s3039_s15 }
   0xe   : > { %p2116_p3 = por %p233_p2, %p232_p1  ;;  %p35_p4 = scmp.ge.s32.totalorder %s3041_s16, 2 }
   0xf   : > { %p239_p6 = scmp.eq.s32.totalorder %s1774_s14, 3  ;;  %p1777_p7 = scmp.ge.s32.totalorder %s2016_s12, 1 }
  0x10   : > { %s3043_s16 = smov (%p35_p4, %s3041_s16), 0  ;;  %p294_p9 = scmp.lt.s32.totalorder %s2016_s12, 5 }
  0x11   : > { %3019 = sst [smem:[#allocation7_spill]] %s3043_s16  ;;  %p2125_p8 = por %p239_p6, %p238_p5 }
  0x12   : > { %s217_s20 = ssub.s32 %s2012_s11, %s3043_s16  ;;  %s222_s21 = sadd.s32 1, %s1996_s29 }
  0x13   : > { %s219_s22 = sor.u32 %s218_s17, %s217_s20  ;;  %p295_p10 = pnand %p1777_p7, %p294_p9 }
  0x14   : > { %p220_p11 = scmp.eq.s32.totalorder %s219_s22, 0  ;;  %s3021_s1 = sld [smem:[#allocation9_spill]] (!%p295_p10) }
  0x15   : > { %298 = sbr.rel (%p295_p10) target bundleno = 785 (0x311), region = 52  ;;  %p336_p12 = scmp.lt.s32.totalorder (!%p295_p10), %s2004_s9, 1 }
  0x16   : > { %s2134_s23 = scalar_select %p220_p11, %s1996_s29, %s222_s21  }
  0x17   : > { %p343_p13 = scmp.lt.s32.totalorder (!%p295_p10), %s2000_s30, 1  ;;  %s1836_s26 = sshll.u32 (!%p295_p10), %s2000_s30, 7 }
  0x18   : > { %s3022_s0 = sld [smem:[#allocation8_spill]] (!%p295_p10) }
  0x1a   : > { %v398_v0 = vld [vmem:[%s3021_s1] sm:$0xff]  ;;  %vm350_vm0 = vcmask 253952   ;;  %s337_s14 = scalar_select %p336_p12, %s2004_s9, 1  ;;  %v2018_v1 = vmov 0.0   ;;  %vm403_vm1 = vcmask 64512   ;;  %vm371_vm2 = vcmask 261120  }
  0x1b   : > { %1839 = vmatpush.msra.mxu2 %v398_v0  ;;  %1840 = vmatpush.msra.mxu3 %v398_v0  ;;  %351 = vst.msk [vmem:[#allocation2] sm:$0x1] %vm350_vm0, %v2018_v1  ;;  %s344_s17 = scalar_select %p343_p13, %s2000_s30, 1  ;;  %vm374_vm3 = vcmask 254976   ;;  %v2250_v18 = vld [vmem:[%s3006_s2] ss:$0 sm:$0xff] }
  0x1c   : > { %467 = vmatpush.msra.mxu0 %v398_v0  ;;  %1838 = vmatpush.msra.mxu1 %v398_v0  ;;  %352 = vst.msk [vmem:[#allocation2 + $0x18] sm:$0x1] %vm350_vm0, %v2018_v1  ;;  %s1835_s20 = sshll.u32 %s337_s14, 8  ;;  %s1781_s21 = sshll.u32 %s337_s14, 1 }
  0x1d   : > { %353 = vst.msk [vmem:[#allocation2 + $0x30] sm:$0x1] %vm350_vm0, %v2018_v1  ;;  %s346_s13 = sadd.s32 %s1781_s21, %s344_s17  ;;  %s3023_s17 = sand.u32 1, %s1992_s28  }
  0x1e   : > { %s2154_s25 = scalar_lea.vmem %s3022_s0, %s1835_s20  ;;  %354 = vst.msk [vmem:[#allocation2 + $0x48] sm:$0x1] %vm350_vm0, %v2018_v1  ;;  %s1782_s16 = sshll.u32 %s346_s13, 3 }
  0x1f   : > { %s2159_s15 = scalar_lea.vmem %s2154_s25, %s1836_s26  ;;  %355 = vst.msk [vmem:[#allocation2 + $0x60] sm:$0x1] %vm350_vm0, %v2018_v1  ;;  %s2166_s22 = scalar_lea.vmem %s3011_s7, %s1782_s16 }
  0x20   : > { %v390_v2 = vld [vmem:[%s2159_s15 + $0x40] sm:$0xff]  ;;  %s2172_s26 = sshll.u32 %s3023_s17, 3  ;;  %356 = vst.msk [vmem:[#allocation2 + $0x78] sm:$0x1] %vm350_vm0, %v2018_v1  ;;  %s2180_s13 = sshll.u32 %s2000_s30, 3  ;;  %v391_v6 = vld [vmem:[%s2159_s15 + $0x48] sm:$0xff] }
  0x21   : > { %v394_v3 = vld [vmem:[%s2159_s15 + $0x60] sm:$0xff]  ;;  %1793 = vmatmul.msk.f32.vlgmr.msra.gmra.mxu2 %vm403_vm1, %v390_v2  ;;  %372 = vst.msk [vmem:[#allocation2] sm:$0xff] %vm371_vm2, %v2018_v1  ;;  %v395_v7 = vld [vmem:[%s2159_s15 + $0x68] sm:$0xff]  ;;  %v392_v10 = vld [vmem:[%s2159_s15 + $0x50] sm:$0xff]  ;;  %p1801_p0 = scmp.le.s32.totalorder %s2180_s13, 0 }
  0x22   : > { %v382_v4 = vld [vmem:[%s2159_s15] sm:$0xff]  ;;  %1797 = vmatmul.msk.f32.vlgmr.msra.gmra.mxu3 %vm403_vm1, %v394_v3  ;;  %357 = vst.msk [vmem:[#allocation2 + $0x90] sm:$0x1] %vm350_vm0, %v2018_v1  ;;  %v383_v8 = vld [vmem:[%s2159_s15 + $0x8] sm:$0xff]  ;;  %v396_v11 = vld [vmem:[%s2159_s15 + $0x70] sm:$0xff]  ;;  %s3024_s1 = sld [smem:[#allocation9_spill]] (!%p1801_p0) }
  0x23   : > { %v386_v5 = vld [vmem:[%s2159_s15 + $0x20] sm:$0xff]  ;;  %1785 = vmatmul.msk.f32.vlgmr.msra.gmra.mxu0 %vm403_vm1, %v382_v4  ;;  %358 = vst.msk [vmem:[#allocation2 + $0xa8] sm:$0x1] %vm350_vm0, %v2018_v1  ;;  %v387_v9 = vld [vmem:[%s2159_s15 + $0x28] sm:$0xff]  ;;  %v384_v12 = vld [vmem:[%s2159_s15 + $0x10] sm:$0xff]  ;;  %s1802_s17 = sadd.s32 (!%p1801_p0), 4294967295, %s2180_s13 }
  0x24   : > { %1789 = vmatmul.msk.f32.vlgmr.msra.gmra.mxu1 %vm403_vm1, %v386_v5  ;;  %359 = vst.msk [vmem:[#allocation2 + $0xc0] sm:$0x1] %vm350_vm0, %v2018_v1  ;;  %v388_v13 = vld [vmem:[%s2159_s15 + $0x30] sm:$0xff]  ;;  %v393_v14 = vld [vmem:[%s2159_s15 + $0x58] sm:$0xff]  ;;  %s1803_s16 = sshll.u32 (!%p1801_p0), %s1802_s17, 4 }
  0x25   : > { %360 = vst.msk [vmem:[#allocation2 + $0xd8] sm:$0x1] %vm350_vm0, %v2018_v1  ;;  %v397_v15 = vld [vmem:[%s2159_s15 + $0x78] sm:$0xff]  ;;  %s572_s21 = scalar_lea.vmem (!%p1801_p0), %s2154_s25, %s1803_s16 }
  0x26   : > { %361 = vst.msk [vmem:[#allocation2 + $0x11] sm:$0x1] %vm350_vm0, %v2018_v1  ;;  %v385_v16 = vld [vmem:[%s2159_s15 + $0x18] sm:$0xff] }
  0x27   : > { %362 = vst.msk [vmem:[#allocation2 + $0x29] sm:$0x1] %vm350_vm0, %v2018_v1  ;;  %v389_v17 = vld [vmem:[%s2159_s15 + $0x38] sm:$0xff] }
  0x28   : > { %363 = vst.msk [vmem:[#allocation2 + $0x41] sm:$0x1] %vm350_vm0, %v2018_v1 }
  0x29   : > { %1794 = vmatmul.msk.f32.gmra.mxu2 %vm403_vm1, %v391_v6  ;;  %364 = vst.msk [vmem:[#allocation2 + $0x59] sm:$0x1] %vm350_vm0, %v2018_v1 }
  0x2a   : > { %1798 = vmatmul.msk.f32.gmra.mxu3 %vm403_vm1, %v395_v7  ;;  %365 = vst.msk [vmem:[#allocation2 + $0x71] sm:$0x1] %vm350_vm0, %v2018_v1 }
  0x2b   : > { %1786 = vmatmul.msk.f32.gmra.mxu0 %vm403_vm1, %v383_v8  ;;  %366 = vst.msk [vmem:[#allocation2 + $0x89] sm:$0x1] %vm350_vm0, %v2018_v1 }
  0x2c   : > { %1790 = vmatmul.msk.f32.gmra.mxu1 %vm403_vm1, %v387_v9  ;;  %367 = vst.msk [vmem:[#allocation2 + $0xa1] sm:$0x1] %vm350_vm0, %v2018_v1 }
  0x2d   : > { %368 = vst.msk [vmem:[#allocation2 + $0xb9] sm:$0x1] %vm350_vm0, %v2018_v1 }
  0x2e   : > { %369 = vst.msk [vmem:[#allocation2 + $0xd1] sm:$0x1] %vm350_vm0, %v2018_v1 }
  0x2f   : > { %370 = vst.msk [vmem:[#allocation2 + $0xe9] sm:$0x1] %vm350_vm0, %v2018_v1 }
  0x30   : > { %373 = vst.msk [vmem:[#allocation2 + $0x8] sm:$0xff] %vm371_vm2, %v2018_v1 }
  0x31   : > { %1795 = vmatmul.msk.f32.gmra.mxu2 %vm403_vm1, %v392_v10  ;;  %375 = vst.msk [vmem:[#allocation2 + $0x10] sm:$0x3] %vm374_vm3, %v2018_v1 }
  0x32   : > { %1799 = vmatmul.msk.f32.gmra.mxu3 %vm403_vm1, %v396_v11  ;;  %377 = vst.msk [vmem:[#allocation2 + $0xd8] sm:$0xff] %vm371_vm2, %v2018_v1 }
  0x33   : > { %1787 = vmatmul.msk.f32.gmra.mxu0 %vm403_vm1, %v384_v12  ;;  %378 = vst.msk [vmem:[#allocation2 + $0xe0] sm:$0xff] %vm371_vm2, %v2018_v1 }
  0x34   : > { %1791 = vmatmul.msk.f32.gmra.mxu1 %vm403_vm1, %v388_v13  ;;  %379 = vst.msk [vmem:[#allocation2 + $0xe8] sm:$0x3] %vm374_vm3, %v2018_v1 }
  0x39   : > { %1796 = vmatmul.msk.f32.gmra.mxu2 %vm403_vm1, %v393_v14 }
  0x3a   : > { %1800 = vmatmul.msk.f32.gmra.mxu3 %vm403_vm1, %v397_v15 }
  0x3b   : > { %1788 = vmatmul.msk.f32.gmra.mxu0 %vm403_vm1, %v385_v16 }
  0x3c   : > { %1792 = vmatmul.msk.f32.gmra.mxu1 %vm403_vm1, %v389_v17 }
  0xa0   : > { %v469_v19 = vpop.f32.mrf.mxu0 }
  0xa1   : > { %v481_v20 = vpop.f32.mrf.mxu1  ;;  %v470_v21 = vadd.f32 %v2250_v18, %v469_v19 }
  0xa2   : > { %v482_v22 = vadd.f32 %v2250_v18, %v481_v20 }
  0xa3   : > { %v517_v23 = vmax.f32 %v470_v21, 0.0 }
  0xa4   : > { %v521_v24 = vmax.f32 %v482_v22, 0.0  ;;  %v493_v27 = vpop.f32.mrf.mxu2 }
  0xa5   : > { %v533_v25 = vmin.f32 %v517_v23, 6.0  ;;  %v505_v28 = vpop.f32.mrf.mxu3  ;;  %v494_v29 = vadd.f32 %v2250_v18, %v493_v27 }
  0xa6   : > { %v537_v26 = vmin.f32 %v521_v24, 6.0  ;;  %v506_v30 = vadd.f32 %v2250_v18, %v505_v28 }
  0xa7   : > { %550 = vst.msk [vmem:[#allocation2 + $0x19] sm:$0xff] %vm371_vm2, %v533_v25  ;;  %v525_v31 = vmax.f32 %v494_v29, 0.0 }
  0xa8   : > { %554 = vst.msk [vmem:[#allocation2 + $0x49] sm:$0xff] %vm371_vm2, %v537_v26  ;;  %v529_v32 = vmax.f32 %v506_v30, 0.0  ;;  %v472_v33 = vpop.f32.mrf.mxu0 }
  0xa9   : > { %v484_v34 = vpop.f32.mrf.mxu1  ;;  %v473_v35 = vadd.f32 %v2250_v18, %v472_v33  ;;  %v541_v37 = vmin.f32 %v525_v31, 6.0 }
  0xaa   : > { %v485_v36 = vadd.f32 %v2250_v18, %v484_v34  ;;  %v545_v38 = vmin.f32 %v529_v32, 6.0 }
  0xab   : > { %v518_v39 = vmax.f32 %v473_v35, 0.0  ;;  %558 = vst.msk [vmem:[#allocation2 + $0x79] sm:$0xff] %vm371_vm2, %v541_v37 }
  0xac   : > { %v522_v40 = vmax.f32 %v485_v36, 0.0  ;;  %562 = vst.msk [vmem:[#allocation2 + $0xa9] sm:$0xff] %vm371_vm2, %v545_v38  ;;  %v496_v43 = vpop.f32.mrf.mxu2 }
  0xad   : > { %v534_v41 = vmin.f32 %v518_v39, 6.0  ;;  %v508_v44 = vpop.f32.mrf.mxu3  ;;  %v497_v45 = vadd.f32 %v2250_v18, %v496_v43 }
  0xae   : > { %v538_v42 = vmin.f32 %v522_v40, 6.0  ;;  %v509_v46 = vadd.f32 %v2250_v18, %v508_v44 }
  0xaf   : > { %551 = vst.msk [vmem:[#allocation2 + $0x21] sm:$0xff] %vm371_vm2, %v534_v41  ;;  %v526_v47 = vmax.f32 %v497_v45, 0.0 }
  0xb0   : > { %555 = vst.msk [vmem:[#allocation2 + $0x51] sm:$0xff] %vm371_vm2, %v538_v42  ;;  %v530_v48 = vmax.f32 %v509_v46, 0.0  ;;  %v475_v49 = vpop.f32.mrf.mxu0 }
  0xb1   : > { %v487_v50 = vpop.f32.mrf.mxu1  ;;  %v476_v51 = vadd.f32 %v2250_v18, %v475_v49  ;;  %v542_v53 = vmin.f32 %v526_v47, 6.0 }
  0xb2   : > { %v488_v52 = vadd.f32 %v2250_v18, %v487_v50  ;;  %v546_v54 = vmin.f32 %v530_v48, 6.0 }
  0xb3   : > { %v519_v55 = vmax.f32 %v476_v51, 0.0  ;;  %559 = vst.msk [vmem:[#allocation2 + $0x81] sm:$0xff] %vm371_vm2, %v542_v53 }
  0xb4   : > { %v523_v56 = vmax.f32 %v488_v52, 0.0  ;;  %563 = vst.msk [vmem:[#allocation2 + $0xb1] sm:$0xff] %vm371_vm2, %v546_v54  ;;  %v499_v59 = vpop.f32.mrf.mxu2 }
  0xb5   : > { %v535_v57 = vmin.f32 %v519_v55, 6.0  ;;  %v511_v60 = vpop.f32.mrf.mxu3  ;;  %v500_v61 = vadd.f32 %v2250_v18, %v499_v59 }
  0xb6   : > { %v539_v58 = vmin.f32 %v523_v56, 6.0  ;;  %v512_v62 = vadd.f32 %v2250_v18, %v511_v60 }
  0xb7   : > { %552 = vst.msk [vmem:[#allocation2 + $0x31] sm:$0xff] %vm371_vm2, %v535_v57  ;;  %v527_v63 = vmax.f32 %v500_v61, 0.0 }
  0xb8   : > { %556 = vst.msk [vmem:[#allocation2 + $0x61] sm:$0xff] %vm371_vm2, %v539_v58  ;;  %v531_v0 = vmax.f32 %v512_v62, 0.0  ;;  %v478_v1 = vpop.f32.mrf.mxu0 }
  0xb9   : > { %v490_v2 = vpop.f32.mrf.mxu1  ;;  %v479_v3 = vadd.f32 %v2250_v18, %v478_v1  ;;  %v543_v5 = vmin.f32 %v527_v63, 6.0 }
  0xba   : > { %v491_v4 = vadd.f32 %v2250_v18, %v490_v2  ;;  %v547_v6 = vmin.f32 %v531_v0, 6.0 }
  0xbb   : > { %v520_v7 = vmax.f32 %v479_v3, 0.0  ;;  %560 = vst.msk [vmem:[#allocation2 + $0x91] sm:$0xff] %vm371_vm2, %v543_v5 }
  0xbc   : > { %v524_v8 = vmax.f32 %v491_v4, 0.0  ;;  %564 = vst.msk [vmem:[#allocation2 + $0xc1] sm:$0xff] %vm371_vm2, %v547_v6  ;;  %v502_v11 = vpop.f32.mrf.mxu2 }
  0xbd   : > { %v536_v9 = vmin.f32 %v520_v7, 6.0  ;;  %v514_v12 = vpop.f32.mrf.mxu3  ;;  %v503_v13 = vadd.f32 %v2250_v18, %v502_v11 }
  0xbe   : > { %v540_v10 = vmin.f32 %v524_v8, 6.0  ;;  %v515_v14 = vadd.f32 %v2250_v18, %v514_v12 }
  0xbf   : > { %553 = vst.msk [vmem:[#allocation2 + $0x39] sm:$0xff] %vm371_vm2, %v536_v9  ;;  %v528_v15 = vmax.f32 %v503_v13, 0.0 }
  0xc0   : > { %557 = vst.msk [vmem:[#allocation2 + $0x69] sm:$0xff] %vm371_vm2, %v540_v10  ;;  %v532_v16 = vmax.f32 %v515_v14, 0.0  ;;  %569 = sbr.rel (%p1801_p0) target bundleno = 333 (0x14d), region = 56 }
  0xc1   : > { %v544_v17 = vmin.f32 %v528_v15, 6.0 }
  0xc2   : > { %v548_v19 = vmin.f32 %v532_v16, 6.0 }
  0xc3   : > { %561 = vst.msk [vmem:[#allocation2 + $0x99] sm:$0xff] %vm371_vm2, %v544_v17 }
  0xc4   : > { %565 = vst.msk [vmem:[#allocation2 + $0xc9] sm:$0xff] %vm371_vm2, %v548_v19 }
  0xc5   : > { %v575_v18 = vld [vmem:[%s3024_s1] sm:$0xff]  ;;  %v574_v21 = vld [vmem:[%s572_s21 + $0x8] sm:$0xff] }
  0xc6   : > { %601 = vmatpush.msra.mxu0 %v575_v18  ;;  %1841 = vmatpush.msra.mxu1 %v575_v18  ;;  %v573_v20 = vld [vmem:[%s572_s21] sm:$0xff] }
  0xc7   : > { %1804 = vmatmul.msk.f32.vlgmr.msra.gmra.mxu0 %vm403_vm1, %v573_v20  ;;  %1805 = vmatmul.msk.f32.vlgmr.msra.gmra.mxu1 %vm403_vm1, %v574_v21  ;;  %v1917_v22 = vld [vmem:[%s3006_s2] ss:$0 sm:$0xff] }
 0x144   : > { %v603_v23 = vpop.f32.mrf.mxu0  ;;  %v606_v24 = vpop.f32.mrf.mxu1 }
 0x145   : > { %v604_v25 = vadd.f32 %v1917_v22, %v603_v23  ;;  %v607_v26 = vadd.f32 %v1917_v22, %v606_v24 }
 0x147   : > { %v609_v27 = vmax.f32 %v604_v25, 0.0  ;;  %v610_v28 = vmax.f32 %v607_v26, 0.0 }
 0x149   : > { %v611_v29 = vmin.f32 %v609_v27, 6.0  ;;  %v612_v30 = vmin.f32 %v610_v28, 6.0 }
 0x14b   : > { %613 = vst.msk [vmem:[#allocation2 + $0x1] sm:$0xff] %vm371_vm2, %v611_v29 }
 0x14c   : > { %614 = vst.msk [vmem:[#allocation2 + $0x9] sm:$0xff] %vm371_vm2, %v612_v30 }
 0x14d PF: > { %s615_s25 = sadd.s32 8, %s2180_s13 }
 0x14e   : > { %p1806_p1 = scmp.ge.s32.totalorder %s615_s25, 16 }
 0x14f   : > { %s3025_s1 = sld [smem:[#allocation9_spill]] (!%p1806_p1) }
 0x150   : > { %619 = sbr.rel (%p1806_p1) target bundleno = 477 (0x1dd), region = 60 }
 0x155   : > { %v624_v31 = vld [vmem:[%s3025_s1] sm:$0xff]  ;;  %v1810_v33 = vld [vmem:[%s2159_s15 + $0x88] sm:$0xff] }
 0x156   : > { %v1809_v32 = vld [vmem:[%s2159_s15 + $0x80] sm:$0xff]  ;;  %650 = vmatpush.msra.mxu0 %v624_v31  ;;  %1842 = vmatpush.msra.mxu1 %v624_v31 }
 0x157   : > { %1811 = vmatmul.msk.f32.vlgmr.msra.gmra.mxu0 %vm403_vm1, %v1809_v32  ;;  %1812 = vmatmul.msk.f32.vlgmr.msra.gmra.mxu1 %vm403_vm1, %v1810_v33  ;;  %v1918_v34 = vld [vmem:[%s3006_s2] ss:$0 sm:$0xff] }
 0x1d4   : > { %v652_v35 = vpop.f32.mrf.mxu0  ;;  %v655_v36 = vpop.f32.mrf.mxu1 }
 0x1d5   : > { %v653_v37 = vadd.f32 %v1918_v34, %v652_v35  ;;  %v656_v38 = vadd.f32 %v1918_v34, %v655_v36 }
 0x1d7   : > { %v658_v39 = vmax.f32 %v653_v37, 0.0  ;;  %v659_v40 = vmax.f32 %v656_v38, 0.0 }
 0x1d9   : > { %v660_v41 = vmin.f32 %v658_v39, 6.0  ;;  %v661_v42 = vmin.f32 %v659_v40, 6.0 }
 0x1db   : > { %662 = vst.msk [vmem:[#allocation2 + $0xd9] sm:$0xff] %vm371_vm2, %v660_v41 }
 0x1dc   : > { %663 = vst.msk [vmem:[#allocation2 + $0xe1] sm:$0xff] %vm371_vm2, %v661_v42 }
 0x1dd PF: > { %v2311_v43 = vld [vmem:[#allocation2 + $0xb8] sm:$0x3]  ;;  %v2313_v44 = vld [vmem:[#allocation2 + $0xb0] sm:$0xff]  ;;  %v2315_v45 = vld [vmem:[#allocation2 + $0xc8] sm:$0xff]  ;;  %vm779_vm4 = vcmask 1046528   ;;  %vm901_vm5 = vcmask 1045504  }
 0x1de   : > { %v2317_v46 = vld [vmem:[#allocation2 + $0xd0] sm:$0x3]  ;;  %v694_v47 = vld [vmem:[%s3007_s3] sm:$0x7]  ;;  %v695_v48 = vld [vmem:[%s3007_s3 + $0x4] sm:$0x7] }
 0x1df   : > { %v696_v49 = vld [vmem:[%s3007_s3 + $0x8] sm:$0x7]  ;;  %v2328_v50 = vperm.slane %v694_v47, 0  ;;  %v2330_v51 = vperm.slane %v694_v47, 1  ;;  %v2332_v52 = vperm.slane %v694_v47, 2  ;;  %v2334_v53 = vperm.slane %v695_v48, 0 }
 0x1e0   : > { %v2336_v54 = vperm.slane %v695_v48, 1  ;;  %v2338_v55 = vperm.slane %v695_v48, 2  ;;  %v2340_v56 = vperm.slane %v696_v49, 0  ;;  %v2342_v57 = vperm.slane %v696_v49, 1  ;;  %v2367_v16 = vld [vmem:[#allocation2 + $0xa8] sm:$0xff]  ;;  %v2371_v21 = vld [vmem:[#allocation2 + $0xc0] sm:$0xff] }
 0x1e1   : > { %v713_v58 = vmul.f32 %v2328_v50, %v2313_v44  ;;  %v753_v59 = vmul.f32 %v2330_v51, %v2313_v44  ;;  %v754_v60 = vmul.f32 %v2330_v51, %v2311_v43  ;;  %v875_v61 = vmul.f32 %v2332_v52, %v2313_v44  ;;  %s1831_s21 = sshll.u32 %s2004_s9, 1  ;;  %s3026_s15 = scalar_lea.vmem [#allocation3], %s2172_s26 }
 0x1e2   : > { %v876_v63 = vmul.f32 %v2332_v52, %v2311_v43  ;;  %v990_v0 = vmul.f32 %v2334_v53, %v2315_v45  ;;  %v1030_v1 = vmul.f32 %v2336_v54, %v2315_v45  ;;  %v1031_v2 = vmul.f32 %v2336_v54, %v2317_v46  ;;  %v691_v35 = vld [vmem:[#allocation2 + $0xd8] sm:$0xff]  ;;  %s1668_s25 = sadd.s32 %s2000_s30, %s1831_s21  ;;  %s1672_s13 = sshll.u32 %s3026_s15, 4  ;;  %s1673_s13 = int_to_ptr.vmem [resolvable:$true] %s1672_s13 }
 0x1e3   : > { %v692_v62 = vld [vmem:[#allocation2 + $0xe0] sm:$0xff]  ;;  %v816_v3 = vrot.slane %v753_v59, 1  ;;  %v818_v4 = vrot.slane %v754_v60, 1  ;;  %v938_v5 = vrot.slane %v875_v61, 2  ;;  %v1151_v6 = vmul.f32 %v2338_v55, %v2315_v45  ;;  %v693_v7 = vld [vmem:[#allocation2 + $0xe8] sm:$0x3]  ;;  %s3027_s17 = smov %s3026_s15 }
 0x1e4   : > { %v940_v8 = vrot.slane %v876_v63, 2  ;;  %v1092_v9 = vrot.slane %v1030_v1, 1  ;;  %v1094_v10 = vrot.slane %v1031_v2, 1  ;;  %v1152_v11 = vmul.f32 %v2338_v55, %v2317_v46  ;;  %v2394_v59 = vld [vmem:[#allocation2 + $0x98] sm:$0xff]  ;;  %s1832_s14 = sshll.u32 %s1668_s25, 3  ;;  %s3028_s9 = sand.u32 1, %s1992_s28  }
 0x1e5   : > { %v819_v12 = vsel %vm779_vm4, %v816_v3, %v818_v4  ;;  %v1213_v13 = vrot.slane %v1151_v6, 2  ;;  %v1265_v14 = vmul.f32 %v2340_v56, %v692_v62  ;;  %v1305_v15 = vmul.f32 %v2342_v57, %v692_v62  ;;  %s1670_s20 = scalar_lea.hbm %s3012_s8, %s1832_s14  ;;  %s1658_s30 = scalar_lea.sflag [#allocation4], %s3028_s9 }
 0x1e6   : > { %v851_v17 = vadd.f32 %v819_v12, %v713_v58  ;;  %v941_v19 = vsel %vm901_vm5, %v938_v5, %v940_v8  ;;  %v1095_v18 = vsel %vm779_vm4, %v1092_v9, %v1094_v10  ;;  %v1215_v20 = vrot.slane %v1152_v11, 2  ;;  %s1674_s1 = sshll.u32 %s1670_s20, 4  ;;  %s1942_s14 = scalar_lea.hbm %s3012_s8, 32  ;;  %s1675_s1 = int_to_ptr.hbm [resolvable:$true] %s1674_s1 }
 0x1e7   : > { %v1306_v22 = vmul.f32 %v2342_v57, %v693_v7  ;;  %v1367_v23 = vrot.slane %v1305_v15, 1  ;;  %v2374_v24 = vperm.slane %v696_v49, 2  ;;  %v712_v25 = vmul.f32 %v2328_v50, %v2367_v16  ;;  %s1936_s16 = sshra.s32 %s1675_s1, 4  ;;  %s1937_s16 = int_to_ptr.hbm [resolvable:$true] %s1936_s16 }
 0x1e8   : > { %v973_v26 = vadd.f32 %v941_v19, %v851_v17  ;;  %v1216_v27 = vsel %vm901_vm5, %v1213_v13, %v1215_v20  ;;  %v752_v28 = vmul.f32 %v2330_v51, %v2367_v16  ;;  %v874_v29 = vmul.f32 %v2332_v52, %v2367_v16  ;;  %s1938_s21 = scalar_lea.hbm %s1937_s16, 8  ;;  %p1943_p6 = scmp.lt.s32.totalorder %s1937_s16, %s3012_s8 }
 0x1e9   : > { %v1369_v30 = vrot.slane %v1306_v22, 1  ;;  %v1426_v31 = vmul.f32 %v2374_v24, %v692_v62  ;;  %v1427_v32 = vmul.f32 %v2374_v24, %v693_v7  ;;  %v989_v33 = vmul.f32 %v2334_v53, %v2371_v21  ;;  %p1939_p2 = scmp.ne.s32.totalorder %s1937_s16, %s1938_s21  ;;  %p1944_p7 = scmp.lt.s32.totalorder %s1942_s14, %s1938_s21 }
 0x1ea   : > { %v1006_v34 = vadd.f32 %v990_v0, %v973_v26  ;;  %v815_v36 = vrot.slane %v752_v28, 1  ;;  %v937_v37 = vrot.slane %v874_v29, 2  ;;  %v1029_v38 = vmul.f32 %v2336_v54, %v2371_v21  ;;  %v2398_v0 = vld [vmem:[#allocation2 + $0xa0] sm:$0x3] }
 0x1eb   : > { %v1370_v39 = vsel %vm779_vm4, %v1367_v23, %v1369_v30  ;;  %v1488_v40 = vrot.slane %v1426_v31, 2  ;;  %v1490_v41 = vrot.slane %v1427_v32, 2  ;;  %v1150_v42 = vmul.f32 %v2338_v55, %v2371_v21  ;;  %p1940_p4 = pnand %p1939_p2, %p2116_p3  ;;  %p1945_p9 = por %p1944_p7, %p1943_p6 }
 0x1ec   : > { %v1127_v47 = vadd.f32 %v1095_v18, %v1006_v34  ;;  %v817_v48 = vsel %vm779_vm4, %v815_v36, %v816_v3  ;;  %v939_v49 = vsel %vm901_vm5, %v937_v37, %v938_v5  ;;  %v1091_v58 = vrot.slane %v1029_v38, 1 }
 0x1ed   : > { %v1491_v60 = vsel %vm901_vm5, %v1488_v40, %v1490_v41  ;;  %v850_v61 = vadd.f32 %v817_v48, %v712_v25  ;;  %v1212_v62 = vrot.slane %v1150_v42, 2  ;;  %v1264_v63 = vmul.f32 %v2340_v56, %v691_v35  ;;  %p1941_p5 = pneg %p1940_p4 }
 0x1ee   : > { %v1248_v1 = vadd.f32 %v1216_v27, %v1127_v47  ;;  %v1093_v2 = vsel %vm779_vm4, %v1091_v58, %v1092_v9  ;;  %v1304_v4 = vmul.f32 %v2342_v57, %v691_v35  ;;  %v1425_v3 = vmul.f32 %v2374_v24, %v691_v35 }
 0x1ef   : > { %v972_v6 = vadd.f32 %v939_v49, %v850_v61  ;;  %v1214_v5 = vsel %vm901_vm5, %v1212_v62, %v1213_v13  ;;  %v711_v7 = vmul.f32 %v2328_v50, %v2394_v59  ;;  %v2408_v8 = vmul.f32 %v2330_v51, %v2394_v59  ;;  %p1946_p10 = pnand %p1945_p9, %p1941_p5 }
 0x1f0   : > { %v1281_v10 = vadd.f32 %v1265_v14, %v1248_v1  ;;  %v1366_v11 = vrot.slane %v1304_v4, 1  ;;  %v1487_v12 = vrot.slane %v1425_v3, 2  ;;  %v751_v9 = vmul.f32 %v2330_v51, %v2398_v0  ;;  %v2422_v14 = vld [vmem:[%s3008_s4] ss:$0 sm:$0xff]  ;;  %v2451_v4 = vld [vmem:[#allocation2 + $0x90] sm:$0xff] }
 0x1f1   : > { %v1005_v15 = vadd.f32 %v989_v33, %v972_v6  ;;  %v811_v17 = vrot.slane %v2408_v8, 1  ;;  %v2415_v19 = vmul.f32 %v2332_v52, %v2394_v59  ;;  %v873_v13 = vmul.f32 %v2332_v52, %v2398_v0 }
 0x1f2   : > { %v1402_v18 = vadd.f32 %v1370_v39, %v1281_v10  ;;  %v1368_v20 = vsel %vm779_vm4, %v1366_v11, %v1367_v23  ;;  %v1489_v22 = vsel %vm901_vm5, %v1487_v12, %v1488_v40  ;;  %v813_v25 = vrot.slane %v751_v9, 1 }
 0x1f3   : > { %v1126_v26 = vadd.f32 %v1093_v2, %v1005_v15  ;;  %v933_v27 = vrot.slane %v2415_v19, 2  ;;  %v935_v28 = vrot.slane %v873_v13, 2  ;;  %v988_v29 = vmul.f32 %v2334_v53, %v2313_v44 }
 0x1f4   : > { %v1523_v30 = vadd.f32 %v1491_v60, %v1402_v18  ;;  %v814_v31 = vsel %vm779_vm4, %v811_v17, %v813_v25  ;;  %v1027_v32 = vmul.f32 %v2336_v54, %v2313_v44  ;;  %v1028_v23 = vmul.f32 %v2336_v54, %v2311_v43 }
 0x1f5   : > { %v1247_v33 = vadd.f32 %v1214_v5, %v1126_v26  ;;  %v849_v34 = vadd.f32 %v814_v31, %v711_v7  ;;  %v936_v35 = vsel %vm901_vm5, %v933_v27, %v935_v28  ;;  %v1148_v36 = vmul.f32 %v2338_v55, %v2313_v44 }
 0x1f6   : > { %v1543_v37 = vadd.f32 %v2422_v14, %v1523_v30  ;;  %v1087_v38 = vrot.slane %v1027_v32, 1  ;;  %v1089_v39 = vrot.slane %v1028_v23, 1  ;;  %v1149_v40 = vmul.f32 %v2338_v55, %v2311_v43 }
 0x1f7   : > { %v1280_v41 = vadd.f32 %v1264_v63, %v1247_v33  ;;  %v971_v42 = vadd.f32 %v936_v35, %v849_v34  ;;  %v1208_v47 = vrot.slane %v1148_v36, 2  ;;  %v1263_v48 = vmul.f32 %v2340_v56, %v2315_v45 }
 0x1f8   : > { %v1559_v49 = vmax.f32 %v1543_v37, 0.0  ;;  %v1090_v58 = vsel %vm779_vm4, %v1087_v38, %v1089_v39  ;;  %v1210_v60 = vrot.slane %v1149_v40, 2  ;;  %v1302_v61 = vmul.f32 %v2342_v57, %v2315_v45  ;;  %v2480_v37 = vld [vmem:[#allocation2 + $0x80] sm:$0xff] }
 0x1f9   : > { %v1401_v62 = vadd.f32 %v1368_v20, %v1280_v41  ;;  %v1004_v1 = vadd.f32 %v988_v29, %v971_v42  ;;  %v1303_v2 = vmul.f32 %v2342_v57, %v2317_v46  ;;  %v1423_v63 = vmul.f32 %v2374_v24, %v2315_v45 }
 0x1fa   : > { %v1575_v3 = vmin.f32 %v1559_v49, 6.0  ;;  %v1211_v6 = vsel %vm901_vm5, %v1208_v47, %v1210_v60  ;;  %v1362_v5 = vrot.slane %v1302_v61, 1  ;;  %v1424_v7 = vmul.f32 %v2374_v24, %v2317_v46 }
 0x1fb   : > { %v1522_v10 = vadd.f32 %v1489_v22, %v1401_v62  ;;  %v1125_v11 = vadd.f32 %v1090_v58, %v1004_v1  ;;  %v1364_v12 = vrot.slane %v1303_v2, 1  ;;  %v1483_v9 = vrot.slane %v1423_v63, 2 }
 0x1fc   : > { %1813 = vmatpush.xpose.msk.msra.mxu0 %vm371_vm2, %v1575_v3  ;;  %v1485_v15 = vrot.slane %v1424_v7, 2  ;;  %v710_v19 = vmul.f32 %v2328_v50, %v2451_v4  ;;  %v749_v45 = vmul.f32 %v2330_v51, %v2451_v4  ;;  %v871_v13 = vmul.f32 %v2332_v52, %v2451_v4 }
 0x1fd   : > { %v1542_v18 = vadd.f32 %v2422_v14, %v1522_v10  ;;  %v1246_v20 = vadd.f32 %v1211_v6, %v1125_v11  ;;  %v1365_v46 = vsel %vm779_vm4, %v1362_v5, %v1364_v12  ;;  %v987_v22 = vmul.f32 %v2334_v53, %v2367_v16 }
 0x1fe   : > { %v1486_v25 = vsel %vm901_vm5, %v1483_v9, %v1485_v15  ;;  %v810_v26 = vrot.slane %v749_v45, 1  ;;  %v932_v28 = vrot.slane %v871_v13, 2  ;;  %v1026_v29 = vmul.f32 %v2336_v54, %v2367_v16 }
 0x1ff   : > { %v1558_v30 = vmax.f32 %v1542_v18, 0.0  ;;  %v1279_v31 = vadd.f32 %v1263_v48, %v1246_v20  ;;  %v1147_v32 = vmul.f32 %v2338_v55, %v2367_v16  ;;  %v1262_v23 = vmul.f32 %v2340_v56, %v2371_v21  ;;  %v2482_v48 = vld [vmem:[#allocation2 + $0x88] sm:$0x3] }
 0x200   : > { %v812_v33 = vsel %vm779_vm4, %v810_v26, %v811_v17  ;;  %v934_v34 = vsel %vm901_vm5, %v932_v28, %v933_v27  ;;  %v1086_v35 = vrot.slane %v1026_v29, 1  ;;  %v1301_v36 = vmul.f32 %v2342_v57, %v2371_v21 }
 0x201   : > { %v1574_v39 = vmin.f32 %v1558_v30, 6.0  ;;  %v1400_v40 = vadd.f32 %v1365_v46, %v1279_v31  ;;  %v848_v41 = vadd.f32 %v812_v33, %v710_v19  ;;  %v1207_v42 = vrot.slane %v1147_v32, 2 }
 0x202   : > { %v1088_v49 = vsel %vm779_vm4, %v1086_v35, %v1087_v38  ;;  %v1361_v58 = vrot.slane %v1301_v36, 1  ;;  %v1422_v8 = vmul.f32 %v2374_v24, %v2371_v21  ;;  %v709_v17 = vmul.f32 %v2328_v50, %v2480_v37  ;;  %v2522_v36 = vld [vmem:[#allocation2 + $0x78] sm:$0xff] }
 0x203   : > { %1814 = vmatpush.xpose.msk.msra.mxu0 %vm371_vm2, %v1574_v39  ;;  %v1521_v27 = vadd.f32 %v1486_v25, %v1400_v40  ;;  %v970_v60 = vadd.f32 %v934_v34, %v848_v41  ;;  %v1209_v61 = vsel %vm901_vm5, %v1207_v42, %v1208_v47  ;;  %v747_v62 = vmul.f32 %v2330_v51, %v2480_v37 }
 0x204   : > { %v1363_v1 = vsel %vm779_vm4, %v1361_v58, %v1362_v5  ;;  %v1482_v2 = vrot.slane %v1422_v8, 2  ;;  %v748_v38 = vmul.f32 %v2330_v51, %v2482_v48  ;;  %v2498_v21 = vmul.f32 %v2332_v52, %v2480_v37 }
 0x205   : > { %v1541_v63 = vadd.f32 %v2422_v14, %v1521_v27  ;;  %v1003_v3 = vadd.f32 %v987_v22, %v970_v60  ;;  %v806_v6 = vrot.slane %v747_v62, 1  ;;  %v870_v47 = vmul.f32 %v2332_v52, %v2482_v48 }
 0x206   : > { %v1484_v7 = vsel %vm901_vm5, %v1482_v2, %v1483_v9  ;;  %v808_v10 = vrot.slane %v748_v38, 1  ;;  %v928_v5 = vrot.slane %v2498_v21, 2  ;;  %v986_v11 = vmul.f32 %v2334_v53, %v2394_v59 }
 0x207   : > { %v1557_v12 = vmax.f32 %v1541_v63, 0.0  ;;  %v1124_v15 = vadd.f32 %v1088_v49, %v1003_v3  ;;  %v930_v19 = vrot.slane %v870_v47, 2  ;;  %v1024_v45 = vmul.f32 %v2336_v54, %v2394_v59 }
 0x208   : > { %v809_v13 = vsel %vm779_vm4, %v806_v6, %v808_v10  ;;  %v1025_v18 = vmul.f32 %v2336_v54, %v2398_v0  ;;  %v1145_v9 = vmul.f32 %v2338_v55, %v2394_v59  ;;  %v1146_v20 = vmul.f32 %v2338_v55, %v2398_v0 }
 0x209   : > { %v1573_v46 = vmin.f32 %v1557_v12, 6.0  ;;  %v1245_v22 = vadd.f32 %v1209_v61, %v1124_v15  ;;  %v847_v25 = vadd.f32 %v809_v13, %v709_v17  ;;  %v931_v26 = vsel %vm901_vm5, %v928_v5, %v930_v19 }
 0x20a   : > { %v1082_v28 = vrot.slane %v1024_v45, 1  ;;  %v1084_v29 = vrot.slane %v1025_v18, 1  ;;  %v1203_v30 = vrot.slane %v1145_v9, 2  ;;  %v1205_v31 = vrot.slane %v1146_v20, 2  ;;  %v2551_v20 = vld [vmem:[#allocation2 + $0x68] sm:$0xff] }
 0x20b   : > { %1815 = vmatpush.xpose.msk.msra.mxu0 %vm371_vm2, %v1573_v46  ;;  %v1278_v32 = vadd.f32 %v1262_v23, %v1245_v22  ;;  %v969_v33 = vadd.f32 %v931_v26, %v847_v25  ;;  %v1261_v34 = vmul.f32 %v2340_v56, %v2313_v44  ;;  %v1299_v35 = vmul.f32 %v2342_v57, %v2313_v44  ;;  %v2558_v26 = vld [vmem:[#allocation2 + $0x70] sm:$0x3] }
 0x20c   : > { %v1085_v39 = vsel %vm779_vm4, %v1082_v28, %v1084_v29  ;;  %v1206_v40 = vsel %vm901_vm5, %v1203_v30, %v1205_v31  ;;  %v1300_v41 = vmul.f32 %v2342_v57, %v2311_v43  ;;  %v1420_v42 = vmul.f32 %v2374_v24, %v2313_v44 }
 0x20d   : > { %v1399_v23 = vadd.f32 %v1363_v1, %v1278_v32  ;;  %v1002_v49 = vadd.f32 %v986_v11, %v969_v33  ;;  %v1357_v58 = vrot.slane %v1299_v35, 1  ;;  %v1421_v8 = vmul.f32 %v2374_v24, %v2311_v43 }
 0x20e   : > { %v1359_v17 = vrot.slane %v1300_v41, 1  ;;  %v1478_v27 = vrot.slane %v1420_v42, 2  ;;  %v708_v60 = vmul.f32 %v2328_v50, %v2522_v36  ;;  %v746_v61 = vmul.f32 %v2330_v51, %v2522_v36 }
 0x20f   : > { %v1520_v62 = vadd.f32 %v1484_v7, %v1399_v23  ;;  %v1123_v2 = vadd.f32 %v1085_v39, %v1002_v49  ;;  %v1480_v38 = vrot.slane %v1421_v8, 2  ;;  %v868_v44 = vmul.f32 %v2332_v52, %v2522_v36 }
 0x210   : > { %v1360_v1 = vsel %vm779_vm4, %v1357_v58, %v1359_v17  ;;  %v805_v21 = vrot.slane %v746_v61, 1  ;;  %v985_v43 = vmul.f32 %v2334_v53, %v2451_v4  ;;  %v1023_v63 = vmul.f32 %v2336_v54, %v2451_v4 }
 0x211   : > { %v1540_v3 = vadd.f32 %v2422_v14, %v1520_v62  ;;  %v1244_v47 = vadd.f32 %v1206_v40, %v1123_v2  ;;  %v1481_v10 = vsel %vm901_vm5, %v1478_v27, %v1480_v38  ;;  %v927_v7 = vrot.slane %v868_v44, 2 }
 0x212   : > { %v807_v11 = vsel %vm779_vm4, %v805_v21, %v806_v6  ;;  %v1081_v12 = vrot.slane %v1023_v63, 1  ;;  %v1144_v15 = vmul.f32 %v2338_v55, %v2451_v4  ;;  %v1260_v19 = vmul.f32 %v2340_v56, %v2367_v16 }
 0x213   : > { %v1556_v45 = vmax.f32 %v1540_v3, 0.0  ;;  %v1277_v13 = vadd.f32 %v1261_v34, %v1244_v47  ;;  %v846_v18 = vadd.f32 %v807_v11, %v708_v60  ;;  %v929_v9 = vsel %vm901_vm5, %v927_v7, %v928_v5 }
 0x214   : > { %v1083_v46 = vsel %vm779_vm4, %v1081_v12, %v1082_v28  ;;  %v1202_v22 = vrot.slane %v1144_v15, 2  ;;  %v1298_v6 = vmul.f32 %v2342_v57, %v2367_v16  ;;  %v1419_v25 = vmul.f32 %v2374_v24, %v2367_v16 }
 0x215   : > { %v1572_v29 = vmin.f32 %v1556_v45, 6.0  ;;  %v1398_v31 = vadd.f32 %v1360_v1, %v1277_v13  ;;  %v968_v32 = vadd.f32 %v929_v9, %v846_v18  ;;  %v707_v33 = vmul.f32 %v2328_v50, %v2551_v20 }
 0x216   : > { %v1204_v5 = vsel %vm901_vm5, %v1202_v22, %v1203_v30  ;;  %v1356_v34 = vrot.slane %v1298_v6, 1  ;;  %v1477_v35 = vrot.slane %v1419_v25, 2  ;;  %v2565_v28 = vmul.f32 %v2330_v51, %v2551_v20  ;;  %v2603_v6 = vld [vmem:[#allocation2 + $0x60] sm:$0xff] }
 0x217   : > { %1816 = vmatpush.xpose.msk.msra.mxu0 %vm371_vm2, %v1572_v29  ;;  %v1519_v39 = vadd.f32 %v1481_v10, %v1398_v31  ;;  %v1001_v16 = vadd.f32 %v985_v43, %v968_v32  ;;  %v745_v40 = vmul.f32 %v2330_v51, %v2558_v26  ;;  %v2572_v41 = vmul.f32 %v2332_v52, %v2551_v20 }
 0x218   : > { %v1358_v42 = vsel %vm779_vm4, %v1356_v34, %v1357_v58  ;;  %v1479_v30 = vsel %vm901_vm5, %v1477_v35, %v1478_v27  ;;  %v801_v23 = vrot.slane %v2565_v28, 1  ;;  %v867_v49 = vmul.f32 %v2332_v52, %v2558_v26 }
 0x219   : > { %v1539_v8 = vadd.f32 %v2422_v14, %v1519_v39  ;;  %v1122_v17 = vadd.f32 %v1083_v46, %v1001_v16  ;;  %v803_v60 = vrot.slane %v745_v40, 1  ;;  %v923_v61 = vrot.slane %v2572_v41, 2 }
 0x21a   : > { %v925_v62 = vrot.slane %v867_v49, 2  ;;  %v984_v2 = vmul.f32 %v2334_v53, %v2480_v37  ;;  %v1021_v58 = vmul.f32 %v2336_v54, %v2480_v37  ;;  %v1022_v27 = vmul.f32 %v2336_v54, %v2482_v48 }
 0x21b   : > { %v1555_v38 = vmax.f32 %v1539_v8, 0.0  ;;  %v1243_v44 = vadd.f32 %v1204_v5, %v1122_v17  ;;  %v804_v1 = vsel %vm779_vm4, %v801_v23, %v803_v60  ;;  %v1142_v21 = vmul.f32 %v2338_v55, %v2480_v37 }
 0x21c   : > { %v845_v43 = vadd.f32 %v804_v1, %v707_v33  ;;  %v926_v63 = vsel %vm901_vm5, %v923_v61, %v925_v62  ;;  %v1077_v3 = vrot.slane %v1021_v58, 1  ;;  %v1079_v47 = vrot.slane %v1022_v27, 1 }
 0x21d   : > { %v1571_v10 = vmin.f32 %v1555_v38, 6.0  ;;  %v1276_v7 = vadd.f32 %v1260_v19, %v1243_v44  ;;  %v1143_v11 = vmul.f32 %v2338_v55, %v2482_v48  ;;  %v1198_v12 = vrot.slane %v1142_v21, 2  ;;  %v2629_v21 = vld [vmem:[#allocation2 + $0x50] sm:$0xff] }
 0x21e   : > { %v967_v15 = vadd.f32 %v926_v63, %v845_v43  ;;  %v1080_v45 = vsel %vm779_vm4, %v1077_v3, %v1079_v47  ;;  %v1259_v13 = vmul.f32 %v2340_v56, %v2394_v59  ;;  %v1296_v18 = vmul.f32 %v2342_v57, %v2394_v59  ;;  %v2631_v43 = vld [vmem:[#allocation2 + $0x58] sm:$0x3] }
 0x21f   : > { %1817 = vmatpush.xpose.msk.msra.mxu0 %vm371_vm2, %v1571_v10  ;;  %v1397_v9 = vadd.f32 %v1358_v42, %v1276_v7  ;;  %v1200_v46 = vrot.slane %v1143_v11, 2  ;;  %v1297_v19 = vmul.f32 %v2342_v57, %v2398_v0  ;;  %v1417_v22 = vmul.f32 %v2374_v24, %v2394_v59 }
 0x220   : > { %v1000_v25 = vadd.f32 %v984_v2, %v967_v15  ;;  %v1352_v29 = vrot.slane %v1296_v18, 1  ;;  %v1418_v31 = vmul.f32 %v2374_v24, %v2398_v0  ;;  %v706_v32 = vmul.f32 %v2328_v50, %v2603_v6 }
 0x221   : > { %v1518_v33 = vadd.f32 %v1479_v30, %v1397_v9  ;;  %v1201_v5 = vsel %vm901_vm5, %v1198_v12, %v1200_v46  ;;  %v1354_v34 = vrot.slane %v1297_v19, 1  ;;  %v1473_v35 = vrot.slane %v1417_v22, 2 }
 0x222   : > { %v1121_v28 = vadd.f32 %v1080_v45, %v1000_v25  ;;  %v1475_v39 = vrot.slane %v1418_v31, 2  ;;  %v743_v59 = vmul.f32 %v2330_v51, %v2603_v6  ;;  %v865_v16 = vmul.f32 %v2332_v52, %v2603_v6 }
 0x223   : > { %v1538_v40 = vadd.f32 %v2422_v14, %v1518_v33  ;;  %v1355_v0 = vsel %vm779_vm4, %v1352_v29, %v1354_v34  ;;  %v983_v41 = vmul.f32 %v2334_v53, %v2522_v36  ;;  %v1020_v42 = vmul.f32 %v2336_v54, %v2522_v36 }
 0x224   : > { %v1242_v30 = vadd.f32 %v1201_v5, %v1121_v28  ;;  %v1476_v49 = vsel %vm901_vm5, %v1473_v35, %v1475_v39  ;;  %v800_v8 = vrot.slane %v743_v59, 1  ;;  %v922_v17 = vrot.slane %v865_v16, 2 }
 0x225   : > { %v1554_v60 = vmax.f32 %v1538_v40, 0.0  ;;  %v1076_v62 = vrot.slane %v1020_v42, 1  ;;  %v1141_v2 = vmul.f32 %v2338_v55, %v2522_v36  ;;  %v1258_v58 = vmul.f32 %v2340_v56, %v2451_v4 }
 0x226   : > { %v1275_v27 = vadd.f32 %v1259_v13, %v1242_v30  ;;  %v802_v38 = vsel %vm779_vm4, %v800_v8, %v801_v23  ;;  %v924_v44 = vsel %vm901_vm5, %v922_v17, %v923_v61  ;;  %v1295_v1 = vmul.f32 %v2342_v57, %v2451_v4 }
 0x227   : > { %v1570_v63 = vmin.f32 %v1554_v60, 6.0  ;;  %v844_v47 = vadd.f32 %v802_v38, %v706_v32  ;;  %v1078_v10 = vsel %vm779_vm4, %v1076_v62, %v1077_v3  ;;  %v1197_v7 = vrot.slane %v1141_v2, 2 }
 0x228   : > { %v1396_v11 = vadd.f32 %v1355_v0, %v1275_v27  ;;  %v1351_v15 = vrot.slane %v1295_v1, 1  ;;  %v1416_v45 = vmul.f32 %v2374_v24, %v2451_v4  ;;  %v705_v23 = vmul.f32 %v2328_v50, %v2629_v21 }
 0x229   : > { %1818 = vmatpush.xpose.msk.msra.mxu0 %vm371_vm2, %v1570_v63  ;;  %v966_v61 = vadd.f32 %v924_v44, %v844_v47  ;;  %v1199_v13 = vsel %vm901_vm5, %v1197_v7, %v1198_v12  ;;  %v2642_v18 = vmul.f32 %v2330_v51, %v2629_v21  ;;  %v742_v3 = vmul.f32 %v2330_v51, %v2631_v43  ;;  %v2679_v7 = vld [vmem:[#allocation2 + $0x48] sm:$0xff] }
 0x22a   : > { %v1517_v9 = vadd.f32 %v1476_v49, %v1396_v11  ;;  %v1353_v46 = vsel %vm779_vm4, %v1351_v15, %v1352_v29  ;;  %v1472_v19 = vrot.slane %v1416_v45, 2  ;;  %v2649_v4 = vmul.f32 %v2332_v52, %v2629_v21 }
 0x22b   : > { %v999_v22 = vadd.f32 %v983_v41, %v966_v61  ;;  %v796_v25 = vrot.slane %v2642_v18, 1  ;;  %v798_v31 = vrot.slane %v742_v3, 1  ;;  %v864_v12 = vmul.f32 %v2332_v52, %v2631_v43 }
 0x22c   : > { %v1537_v32 = vadd.f32 %v2422_v14, %v1517_v9  ;;  %v1474_v33 = vsel %vm901_vm5, %v1472_v19, %v1473_v35  ;;  %v918_v5 = vrot.slane %v2649_v4, 2  ;;  %v982_v29 = vmul.f32 %v2334_v53, %v2551_v20 }
 0x22d   : > { %v1120_v34 = vadd.f32 %v1078_v10, %v999_v22  ;;  %v799_v28 = vsel %vm779_vm4, %v796_v25, %v798_v31  ;;  %v920_v39 = vrot.slane %v864_v12, 2  ;;  %v1018_v59 = vmul.f32 %v2336_v54, %v2551_v20 }
 0x22e   : > { %v1553_v16 = vmax.f32 %v1537_v32, 0.0  ;;  %v843_v40 = vadd.f32 %v799_v28, %v705_v23  ;;  %v1019_v0 = vmul.f32 %v2336_v54, %v2558_v26  ;;  %v1139_v35 = vmul.f32 %v2338_v55, %v2551_v20 }
 0x22f   : > { %v1241_v41 = vadd.f32 %v1199_v13, %v1120_v34  ;;  %v921_v42 = vsel %vm901_vm5, %v918_v5, %v920_v39  ;;  %v1072_v30 = vrot.slane %v1018_v59, 1  ;;  %v1140_v49 = vmul.f32 %v2338_v55, %v2558_v26 }
 0x230   : > { %v1569_v8 = vmin.f32 %v1553_v16, 6.0  ;;  %v965_v17 = vadd.f32 %v921_v42, %v843_v40  ;;  %v1074_v60 = vrot.slane %v1019_v0, 1  ;;  %v1193_v62 = vrot.slane %v1139_v35, 2  ;;  %v2705_v35 = vld [vmem:[#allocation2 + $0x38] sm:$0xff] }
 0x231   : > { %v1274_v2 = vadd.f32 %v1258_v58, %v1241_v41  ;;  %v1195_v27 = vrot.slane %v1140_v49, 2  ;;  %v1257_v38 = vmul.f32 %v2340_v56, %v2480_v37  ;;  %v1293_v44 = vmul.f32 %v2342_v57, %v2480_v37 }
 0x232   : > { %1819 = vmatpush.xpose.msk.msra.mxu0 %vm371_vm2, %v1569_v8  ;;  %v998_v1 = vadd.f32 %v982_v29, %v965_v17  ;;  %v1075_v63 = vsel %vm779_vm4, %v1072_v30, %v1074_v60  ;;  %v1294_v47 = vmul.f32 %v2342_v57, %v2482_v48  ;;  %v1414_v10 = vmul.f32 %v2374_v24, %v2480_v37  ;;  %v2708_v17 = vld [vmem:[#allocation2 + $0x40] sm:$0x3] }
 0x233   : > { %v1395_v58 = vadd.f32 %v1353_v46, %v1274_v2  ;;  %v1196_v11 = vsel %vm901_vm5, %v1193_v62, %v1195_v27  ;;  %v1347_v15 = vrot.slane %v1293_v44, 1  ;;  %v1415_v45 = vmul.f32 %v2374_v24, %v2482_v48 }
 0x234   : > { %v1119_v23 = vadd.f32 %v1075_v63, %v998_v1  ;;  %v1349_v61 = vrot.slane %v1294_v47, 1  ;;  %v1468_v13 = vrot.slane %v1414_v10, 2  ;;  %v704_v18 = vmul.f32 %v2328_v50, %v2679_v7 }
 0x235   : > { %v1516_v3 = vadd.f32 %v1474_v33, %v1395_v58  ;;  %v1470_v9 = vrot.slane %v1415_v45, 2  ;;  %v740_v37 = vmul.f32 %v2330_v51, %v2679_v7  ;;  %v862_v46 = vmul.f32 %v2332_v52, %v2679_v7 }
 0x236   : > { %v1240_v19 = vadd.f32 %v1196_v11, %v1119_v23  ;;  %v1350_v4 = vsel %vm779_vm4, %v1347_v15, %v1349_v61  ;;  %v981_v48 = vmul.f32 %v2334_v53, %v2603_v6  ;;  %v1017_v22 = vmul.f32 %v2336_v54, %v2603_v6 }
 0x237   : > { %v1536_v31 = vadd.f32 %v2422_v14, %v1516_v3  ;;  %v1471_v12 = vsel %vm901_vm5, %v1468_v13, %v1470_v9  ;;  %v795_v32 = vrot.slane %v740_v37, 1  ;;  %v917_v33 = vrot.slane %v862_v46, 2 }
 0x238   : > { %v1273_v29 = vadd.f32 %v1257_v38, %v1240_v19  ;;  %v1071_v34 = vrot.slane %v1017_v22, 1  ;;  %v1138_v28 = vmul.f32 %v2338_v55, %v2603_v6  ;;  %v1256_v39 = vmul.f32 %v2340_v56, %v2522_v36 }
 0x239   : > { %v1552_v59 = vmax.f32 %v1536_v31, 0.0  ;;  %v797_v16 = vsel %vm779_vm4, %v795_v32, %v796_v25  ;;  %v919_v40 = vsel %vm901_vm5, %v917_v33, %v918_v5  ;;  %v1292_v0 = vmul.f32 %v2342_v57, %v2522_v36 }
 0x23a   : > { %v1394_v41 = vadd.f32 %v1350_v4, %v1273_v29  ;;  %v842_v42 = vadd.f32 %v797_v16, %v704_v18  ;;  %v1073_v49 = vsel %vm779_vm4, %v1071_v34, %v1072_v30  ;;  %v1192_v8 = vrot.slane %v1138_v28, 2 }
 0x23b   : > { %v1568_v60 = vmin.f32 %v1552_v59, 6.0  ;;  %v1346_v2 = vrot.slane %v1292_v0, 1  ;;  %v1413_v27 = vmul.f32 %v2374_v24, %v2522_v36  ;;  %v703_v25 = vmul.f32 %v2328_v50, %v2705_v35  ;;  %v2747_v0 = vld [vmem:[#allocation2 + $0x30] sm:$0xff] }
 0x23c   : > { %v1515_v5 = vadd.f32 %v1471_v12, %v1394_v41  ;;  %v964_v38 = vadd.f32 %v919_v40, %v842_v42  ;;  %v1194_v44 = vsel %vm901_vm5, %v1192_v8, %v1193_v62  ;;  %v738_v1 = vmul.f32 %v2330_v51, %v2705_v35 }
 0x23d   : > { %1820 = vmatpush.xpose.msk.msra.mxu0 %vm371_vm2, %v1568_v60  ;;  %v1348_v30 = vsel %vm779_vm4, %v1346_v2, %v1347_v15  ;;  %v1467_v63 = vrot.slane %v1413_v27, 2  ;;  %v739_v47 = vmul.f32 %v2330_v51, %v2708_v17  ;;  %v2723_v36 = vmul.f32 %v2332_v52, %v2705_v35 }
 0x23e   : > { %v1535_v10 = vadd.f32 %v2422_v14, %v1515_v5  ;;  %v997_v58 = vadd.f32 %v981_v48, %v964_v38  ;;  %v791_v11 = vrot.slane %v738_v1, 1  ;;  %v861_v62 = vmul.f32 %v2332_v52, %v2708_v17 }
 0x23f   : > { %v1469_v45 = vsel %vm901_vm5, %v1467_v63, %v1468_v13  ;;  %v793_v23 = vrot.slane %v739_v47, 1  ;;  %v913_v15 = vrot.slane %v2723_v36, 2  ;;  %v980_v61 = vmul.f32 %v2334_v53, %v2629_v21 }
 0x240   : > { %v1551_v18 = vmax.f32 %v1535_v10, 0.0  ;;  %v1118_v3 = vadd.f32 %v1073_v49, %v997_v58  ;;  %v915_v9 = vrot.slane %v861_v62, 2  ;;  %v1015_v37 = vmul.f32 %v2336_v54, %v2629_v21 }
 0x241   : > { %v794_v46 = vsel %vm779_vm4, %v791_v11, %v793_v23  ;;  %v1016_v19 = vmul.f32 %v2336_v54, %v2631_v43  ;;  %v1136_v13 = vmul.f32 %v2338_v55, %v2629_v21  ;;  %v1137_v4 = vmul.f32 %v2338_v55, %v2631_v43 }
 0x242   : > { %v1567_v48 = vmin.f32 %v1551_v18, 6.0  ;;  %v1239_v22 = vadd.f32 %v1194_v44, %v1118_v3  ;;  %v841_v31 = vadd.f32 %v794_v46, %v703_v25  ;;  %v916_v12 = vsel %vm901_vm5, %v913_v15, %v915_v9 }
 0x243   : > { %v1067_v32 = vrot.slane %v1015_v37, 1  ;;  %v1069_v33 = vrot.slane %v1016_v19, 1  ;;  %v1188_v29 = vrot.slane %v1136_v13, 2  ;;  %v1190_v34 = vrot.slane %v1137_v4, 2  ;;  %v2779_v13 = vld [vmem:[#allocation2 + $0x20] sm:$0xff] }
 0x244   : > { %1821 = vmatpush.xpose.msk.msra.mxu0 %vm371_vm2, %v1567_v48  ;;  %v1272_v28 = vadd.f32 %v1256_v39, %v1239_v22  ;;  %v963_v59 = vadd.f32 %v916_v12, %v841_v31  ;;  %v1255_v16 = vmul.f32 %v2340_v56, %v2551_v20  ;;  %v1290_v40 = vmul.f32 %v2342_v57, %v2551_v20  ;;  %v2787_v31 = vld [vmem:[#allocation2 + $0x28] sm:$0x3] }
 0x245   : > { %v1070_v41 = vsel %vm779_vm4, %v1067_v32, %v1069_v33  ;;  %v1191_v42 = vsel %vm901_vm5, %v1188_v29, %v1190_v34  ;;  %v1291_v49 = vmul.f32 %v2342_v57, %v2558_v26  ;;  %v2755_v8 = vmul.f32 %v2374_v24, %v2551_v20 }
 0x246   : > { %v1393_v39 = vadd.f32 %v1348_v30, %v1272_v28  ;;  %v996_v60 = vadd.f32 %v980_v61, %v963_v59  ;;  %v1342_v2 = vrot.slane %v1290_v40, 1  ;;  %v1412_v27 = vmul.f32 %v2374_v24, %v2558_v26 }
 0x247   : > { %v1344_v25 = vrot.slane %v1291_v49, 1  ;;  %v1463_v5 = vrot.slane %v2755_v8, 2  ;;  %v702_v38 = vmul.f32 %v2328_v50, %v2747_v0  ;;  %v737_v44 = vmul.f32 %v2330_v51, %v2747_v0  ;;  %v2838_v8 = vld [vmem:[#allocation2 + $0x18] sm:$0xff] }
 0x248   : > { %v1514_v1 = vadd.f32 %v1469_v45, %v1393_v39  ;;  %v1117_v63 = vadd.f32 %v1070_v41, %v996_v60  ;;  %v1465_v47 = vrot.slane %v1412_v27, 2  ;;  %v859_v20 = vmul.f32 %v2332_v52, %v2747_v0 }
 0x249   : > { %v1345_v30 = vsel %vm779_vm4, %v1342_v2, %v1344_v25  ;;  %v790_v36 = vrot.slane %v737_v44, 1  ;;  %v1014_v26 = vmul.f32 %v2336_v54, %v2679_v7  ;;  %v979_v23 = vmul.f32 %v2334_v53, %v2679_v7 }
 0x24a   : > { %v1534_v10 = vadd.f32 %v2422_v14, %v1514_v1  ;;  %v1238_v58 = vadd.f32 %v1191_v42, %v1117_v63  ;;  %v912_v62 = vrot.slane %v859_v20, 2  ;;  %v1466_v45 = vsel %vm901_vm5, %v1463_v5, %v1465_v47 }
 0x24b   : > { %v792_v61 = vsel %vm779_vm4, %v790_v36, %v791_v11  ;;  %v1066_v18 = vrot.slane %v1014_v26, 1  ;;  %v1135_v3 = vmul.f32 %v2338_v55, %v2679_v7  ;;  %v1254_v48 = vmul.f32 %v2340_v56, %v2603_v6 }
 0x24c   : > { %v1550_v9 = vmax.f32 %v1534_v10, 0.0  ;;  %v1271_v37 = vadd.f32 %v1255_v16, %v1238_v58  ;;  %v840_v46 = vadd.f32 %v792_v61, %v702_v38  ;;  %v914_v19 = vsel %vm901_vm5, %v912_v62, %v913_v15 }
 0x24d   : > { %v1187_v4 = vrot.slane %v1135_v3, 2  ;;  %v1289_v22 = vmul.f32 %v2342_v57, %v2603_v6  ;;  %v1410_v11 = vmul.f32 %v2374_v24, %v2603_v6  ;;  %v1068_v28 = vsel %vm779_vm4, %v1066_v18, %v1067_v32 }
 0x24e   : > { %v1566_v12 = vmin.f32 %v1550_v9, 6.0  ;;  %v1392_v33 = vadd.f32 %v1345_v30, %v1271_v37  ;;  %v962_v34 = vadd.f32 %v914_v19, %v840_v46  ;;  %v701_v16 = vmul.f32 %v2328_v50, %v2779_v13 }
 0x24f   : > { %v1189_v15 = vsel %vm901_vm5, %v1187_v4, %v1188_v29  ;;  %v1341_v59 = vrot.slane %v1289_v22, 1  ;;  %v2795_v40 = vmul.f32 %v2330_v51, %v2779_v13  ;;  %v736_v42 = vmul.f32 %v2330_v51, %v2787_v31 }
 0x250   : > { %1822 = vmatpush.xpose.msk.msra.mxu0 %vm371_vm2, %v1566_v12  ;;  %v1513_v6 = vadd.f32 %v1466_v45, %v1392_v33  ;;  %v995_v41 = vadd.f32 %v979_v23, %v962_v34  ;;  %v2802_v32 = vmul.f32 %v2332_v52, %v2779_v13  ;;  %v1462_v49 = vrot.slane %v1410_v11, 2 }
 0x251   : > { %v1343_v29 = vsel %vm779_vm4, %v1341_v59, %v1342_v2  ;;  %v786_v39 = vrot.slane %v2795_v40, 1  ;;  %v858_v60 = vmul.f32 %v2332_v52, %v2787_v31  ;;  %v788_v38 = vrot.slane %v736_v42, 1 }
 0x252   : > { %v1533_v27 = vadd.f32 %v2422_v14, %v1513_v6  ;;  %v1116_v25 = vadd.f32 %v1068_v28, %v995_v41  ;;  %v908_v44 = vrot.slane %v2802_v32, 2  ;;  %v978_v63 = vmul.f32 %v2334_v53, %v2705_v35 }
 0x253   : > { %v910_v1 = vrot.slane %v858_v60, 2  ;;  %v1012_v47 = vmul.f32 %v2336_v54, %v2705_v35  ;;  %v1013_v2 = vmul.f32 %v2336_v54, %v2708_v17  ;;  %v789_v36 = vsel %vm779_vm4, %v786_v39, %v788_v38 }
 0x254   : > { %v1549_v20 = vmax.f32 %v1533_v27, 0.0  ;;  %v1237_v30 = vadd.f32 %v1189_v15, %v1116_v25  ;;  %v2819_v26 = vmul.f32 %v2338_v55, %v2705_v35  ;;  %v839_v10 = vadd.f32 %v789_v36, %v701_v16 }
 0x255   : > { %v911_v58 = vsel %vm901_vm5, %v908_v44, %v910_v1  ;;  %v1062_v62 = vrot.slane %v1012_v47, 1  ;;  %v1064_v23 = vrot.slane %v1013_v2, 1  ;;  %v1134_v18 = vmul.f32 %v2338_v55, %v2708_v17 }
 0x256   : > { %v1565_v45 = vmin.f32 %v1549_v20, 6.0  ;;  %v1270_v61 = vadd.f32 %v1254_v48, %v1237_v30  ;;  %v1183_v3 = vrot.slane %v2819_v26, 2  ;;  %v1464_v9 = vsel %vm901_vm5, %v1462_v49, %v1463_v5  ;;  %v665_v26 = vld [vmem:[#allocation2 + $0x8] sm:$0xff] }
 0x257   : > { %v961_v37 = vadd.f32 %v911_v58, %v839_v10  ;;  %v1065_v46 = vsel %vm779_vm4, %v1062_v62, %v1064_v23  ;;  %v1287_v19 = vmul.f32 %v2342_v57, %v2629_v21  ;;  %v1185_v22 = vrot.slane %v1134_v18, 2  ;;  %v666_v10 = vld [vmem:[#allocation2 + $0x10] sm:$0x3] }
 0x258   : > { %1823 = vmatpush.xpose.msk.msra.mxu0 %vm371_vm2, %v1565_v45  ;;  %v1391_v4 = vadd.f32 %v1343_v29, %v1270_v61  ;;  %v1288_v48 = vmul.f32 %v2342_v57, %v2631_v43  ;;  %v2836_v11 = vmul.f32 %v2374_v24, %v2629_v21  ;;  %v1253_v12 = vmul.f32 %v2340_v56, %v2629_v21 }
 0x259   : > { %v994_v5 = vadd.f32 %v978_v63, %v961_v37  ;;  %v1337_v33 = vrot.slane %v1287_v19, 1  ;;  %v1409_v34 = vmul.f32 %v2374_v24, %v2631_v43  ;;  %v1186_v15 = vsel %vm901_vm5, %v1183_v3, %v1185_v22 }
 0x25a   : > { %v1512_v28 = vadd.f32 %v1464_v9, %v1391_v4  ;;  %v1339_v59 = vrot.slane %v1288_v48, 1  ;;  %v1458_v16 = vrot.slane %v2836_v11, 2  ;;  %v734_v41 = vmul.f32 %v2330_v51, %v2838_v8 }
 0x25b   : > { %v1115_v40 = vadd.f32 %v1065_v46, %v994_v5  ;;  %v1460_v6 = vrot.slane %v1409_v34, 2  ;;  %v856_v42 = vmul.f32 %v2332_v52, %v2838_v8  ;;  %v700_v43 = vmul.f32 %v2328_v50, %v2838_v8 }
 0x25c   : > { %v1532_v21 = vadd.f32 %v2422_v14, %v1512_v28  ;;  %v1340_v32 = vsel %vm779_vm4, %v1337_v33, %v1339_v59  ;;  %v1011_v29 = vmul.f32 %v2336_v54, %v2747_v0  ;;  %v785_v60 = vrot.slane %v734_v41, 1 }
 0x25d   : > { %v1236_v49 = vadd.f32 %v1186_v15, %v1115_v40  ;;  %v907_v27 = vrot.slane %v856_v42, 2  ;;  %v977_v25 = vmul.f32 %v2334_v53, %v2747_v0  ;;  %v1461_v1 = vsel %vm901_vm5, %v1458_v16, %v1460_v6 }
 0x25e   : > { %v1548_v38 = vmax.f32 %v1532_v21, 0.0  ;;  %v1061_v63 = vrot.slane %v1011_v29, 1  ;;  %v1132_v47 = vmul.f32 %v2338_v55, %v2747_v0  ;;  %v787_v20 = vsel %vm779_vm4, %v785_v60, %v786_v39 }
 0x25f   : > { %v1269_v2 = vadd.f32 %v1253_v12, %v1236_v49  ;;  %v909_v30 = vsel %vm901_vm5, %v907_v27, %v908_v44  ;;  %v1286_v36 = vmul.f32 %v2342_v57, %v2679_v7  ;;  %v838_v23 = vadd.f32 %v787_v20, %v700_v43 }
 0x260   : > { %v1564_v58 = vmin.f32 %v1548_v38, 6.0  ;;  %v1182_v45 = vrot.slane %v1132_v47, 2  ;;  %v1252_v61 = vmul.f32 %v2340_v56, %v2679_v7  ;;  %v1063_v9 = vsel %vm779_vm4, %v1061_v63, %v1062_v62 }
 0x261   : > { %v1390_v18 = vadd.f32 %v1340_v32, %v1269_v2  ;;  %v1336_v37 = vrot.slane %v1286_v36, 1  ;;  %v1407_v39 = vmul.f32 %v2374_v24, %v2679_v7  ;;  %v960_v44 = vadd.f32 %v909_v30, %v838_v23 }
 0x262   : > { %1824 = vmatpush.xpose.msk.msra.mxu0 %vm371_vm2, %v1564_v58  ;;  %v699_v46 = vmul.f32 %v2328_v50, %v665_v26  ;;  %v2875_v19 = vmul.f32 %v2330_v51, %v665_v26  ;;  %v733_v4 = vmul.f32 %v2330_v51, %v666_v10  ;;  %v1184_v48 = vsel %vm901_vm5, %v1182_v45, %v1183_v3 }
 0x263   : > { %v1511_v22 = vadd.f32 %v1461_v1, %v1390_v18  ;;  %v1338_v5 = vsel %vm779_vm4, %v1336_v37, %v1337_v33  ;;  %v854_v62 = vmul.f32 %v2332_v52, %v665_v26  ;;  %v993_v12 = vadd.f32 %v977_v25, %v960_v44 }
 0x264   : > { %v781_v7 = vrot.slane %v2875_v19, 1  ;;  %v783_v34 = vrot.slane %v733_v4, 1  ;;  %v855_v28 = vmul.f32 %v2332_v52, %v666_v10  ;;  %v1457_v59 = vrot.slane %v1407_v39, 2  ;;  %v664_v10 = vld [vmem:[#allocation2] sm:$0xff] }
 0x265   : > { %v1531_v15 = vadd.f32 %v2422_v14, %v1511_v22  ;;  %v903_v40 = vrot.slane %v854_v62, 2  ;;  %v976_v6 = vmul.f32 %v2334_v53, %v2779_v13  ;;  %v1114_v41 = vadd.f32 %v1063_v9, %v993_v12 }
 0x266   : > { %v784_v3 = vsel %vm779_vm4, %v781_v7, %v783_v34  ;;  %v905_v42 = vrot.slane %v855_v28, 2  ;;  %v2889_v33 = vmul.f32 %v2336_v54, %v2779_v13  ;;  %v1010_v43 = vmul.f32 %v2336_v54, %v2787_v31 }
 0x267   : > { %v1547_v21 = vmax.f32 %v1531_v15, 0.0  ;;  %v837_v32 = vadd.f32 %v784_v3, %v699_v46  ;;  %v2895_v14 = vmul.f32 %v2338_v55, %v2779_v13  ;;  %v1235_v29 = vadd.f32 %v1184_v48, %v1114_v41  ;;  %v1577_v41 = vld [vmem:[%s3010_s6] sm:$0xff] }
 0x268   : > { %v906_v49 = vsel %vm901_vm5, %v903_v40, %v905_v42  ;;  %v1057_v60 = vrot.slane %v2889_v33, 1  ;;  %v1131_v27 = vmul.f32 %v2338_v55, %v2787_v31  ;;  %v1059_v1 = vrot.slane %v1010_v43, 1 }
 0x269   : > { %v1563_v25 = vmin.f32 %v1547_v21, 6.0  ;;  %v959_v38 = vadd.f32 %v906_v49, %v837_v32  ;;  %v1178_v63 = vrot.slane %v2895_v14, 2  ;;  %v1268_v47 = vadd.f32 %v1252_v61, %v1235_v29 }
 0x26a   : > { %v1459_v2 = vsel %vm901_vm5, %v1457_v59, %v1458_v16  ;;  %v1180_v13 = vrot.slane %v1131_v27, 2  ;;  %v1284_v20 = vmul.f32 %v2342_v57, %v2705_v35  ;;  %v1060_v36 = vsel %vm779_vm4, %v1057_v60, %v1059_v1 }
 0x26b   : > { %1825 = vmatpush.xpose.msk.msra.mxu0 %vm371_vm2, %v1563_v25  ;;  %v992_v30 = vadd.f32 %v976_v6, %v959_v38  ;;  %v1285_v31 = vmul.f32 %v2342_v57, %v2708_v17  ;;  %v1405_v26 = vmul.f32 %v2374_v24, %v2705_v35  ;;  %v1389_v58 = vadd.f32 %v1338_v5, %v1268_v47 }
 0x26c   : > { %v1181_v11 = vsel %vm901_vm5, %v1178_v63, %v1180_v13  ;;  %v1332_v16 = vrot.slane %v1284_v20, 1  ;;  %v1406_v23 = vmul.f32 %v2374_v24, %v2708_v17  ;;  %v1251_v61 = vmul.f32 %v2340_v56, %v2705_v35  ;;  %v1921_v17 = vld [vmem:[%s3008_s4] ss:$0 sm:$0xff] }
 0x26d   : > { %v1113_v45 = vadd.f32 %v1060_v36, %v992_v30  ;;  %v1334_v18 = vrot.slane %v1285_v31, 1  ;;  %v1453_v9 = vrot.slane %v1405_v26, 2  ;;  %v1510_v37 = vadd.f32 %v1459_v2, %v1389_v58  ;;  %v1654_v36 = vld [vmem:[%s2166_s22] sm:$0xff] }
 0x26e   : > { %v1455_v39 = vrot.slane %v1406_v23, 2  ;;  %v731_v44 = vmul.f32 %v2330_v51, %v664_v10  ;;  %v853_v46 = vmul.f32 %v2332_v52, %v664_v10  ;;  %v698_v4 = vmul.f32 %v2328_v50, %v664_v10 }
 0x26f   : > { %v1234_v19 = vadd.f32 %v1181_v11, %v1113_v45  ;;  %v1008_v22 = vmul.f32 %v2336_v54, %v2838_v8  ;;  %v1530_v48 = vadd.f32 %v1921_v17, %v1510_v37  ;;  %v1335_v35 = vsel %vm779_vm4, %v1332_v16, %v1334_v18 }
 0x270   : > { %v780_v5 = vrot.slane %v731_v44, 1  ;;  %v902_v62 = vrot.slane %v853_v46, 2  ;;  %v1456_v51 = vsel %vm901_vm5, %v1453_v9, %v1455_v39  ;;  %v1129_v52 = vmul.f32 %v2338_v55, %v2838_v8 }
 0x271   : > { %v1267_v12 = vadd.f32 %v1251_v61, %v1234_v19  ;;  %v1546_v34 = vmax.f32 %v1530_v48, 0.0  ;;  %v1056_v28 = vrot.slane %v1008_v22, 1  ;;  %v975_v6 = vmul.f32 %v2334_v53, %v2838_v8 }
 0x272   : > { %v782_v50 = vsel %vm779_vm4, %v780_v5, %v781_v7  ;;  %v904_v54 = vsel %vm901_vm5, %v902_v62, %v903_v40  ;;  %v1177_v42 = vrot.slane %v1129_v52, 2  ;;  %v1283_v55 = vmul.f32 %v2342_v57, %v2747_v0 }
 0x273   : > { %v1388_v15 = vadd.f32 %v1335_v35, %v1267_v12  ;;  %v836_v59 = vadd.f32 %v782_v50, %v698_v4  ;;  %v1562_v3 = vmin.f32 %v1546_v34, 6.0  ;;  %v2019_v7 = vmov 0  }
 0x274   : > { %1919 = vset.pattern.permute.xlu0 %v2019_v7  ;;  %v1058_v40 = vsel %vm779_vm4, %v1056_v28, %v1057_v60  ;;  %v1404_v53 = vmul.f32 %v2374_v24, %v2747_v0  ;;  %v1179_v43 = vsel %vm901_vm5, %v1177_v42, %v1178_v63  ;;  %v1331_v14 = vrot.slane %v1283_v55, 1 }
 0x275   : > { %v1509_v33 = vadd.f32 %v1456_v51, %v1388_v15  ;;  %v958_v21 = vadd.f32 %v904_v54, %v836_v59  ;;  %1826 = vmatpush.xpose.msk.msra.mxu0 %vm371_vm2, %v1562_v3  ;;  %1580 = vperm.xlu0 %1919, %v1577_v41   ;;  %v1250_v57 = vmul.f32 %v2340_v56, %v2747_v0  ;;  %v1576_v56 = vld [vmem:[%s3009_s5] sm:$0xff] }
 0x276   : > { %v1452_v27 = vrot.slane %v1404_v53, 2  ;;  %v1333_v60 = vsel %vm779_vm4, %v1331_v14, %v1332_v16 }
 0x277   : > { %v1529_v8 = vadd.f32 %v1921_v17, %v1509_v33  ;;  %v991_v32 = vadd.f32 %v975_v6, %v958_v21 }
 0x278   : > { %v1454_v1 = vsel %vm901_vm5, %v1452_v27, %v1453_v9 }
 0x279   : > { %v1545_v29 = vmax.f32 %v1529_v8, 0.0  ;;  %v1112_v49 = vadd.f32 %v1058_v40, %v991_v32 }
 0x27b   : > { %v1561_v25 = vmin.f32 %v1545_v29, 6.0  ;;  %v1233_v38 = vadd.f32 %v1179_v43, %v1112_v49 }
 0x27d   : > { %1827 = vmatpush.xpose.msk.msra.mxu0 %vm371_vm2, %v1561_v25  ;;  %v1266_v24 = vadd.f32 %v1250_v57, %v1233_v38 }
 0x27f   : > { %v1387_v63 = vadd.f32 %v1333_v60, %v1266_v24 }
 0x281   : > { %v1508_v47 = vadd.f32 %v1454_v1, %v1387_v63 }
 0x283   : > { %v1528_v2 = vadd.f32 %v1921_v17, %v1508_v47 }
 0x285   : > { %v1544_v13 = vmax.f32 %v1528_v2, 0.0 }
 0x287   : > { %v1560_v20 = vmin.f32 %v1544_v13, 6.0 }
 0x289   : > { %1828 = vmatpush.xpose.msk.msra.mxu0 %vm371_vm2, %v1560_v20 }
 0x28c   : > { %1829 = vmatmul.msk.f32.vlgmr.msra.gmra.mxu0 %vm371_vm2, %v1576_v56 }
 0x2e7   : > { %v1581_v0 = vpop.permute.xlu0 %1580 }
 0x309   : > { %v1651_v30 = vpop.f32.mrf.mxu0 }
 0x30a   : > { %v1652_v31 = vadd.f32 %v1651_v30, %v1581_v0 }
 0x30c   : > { %v1655_v26 = vadd.f32 %v1654_v36, %v1652_v31 }
 0x30e   : > { %1656 = vst [vmem:[%s3027_s17] sm:$0xff] %v1655_v26 }
 0x30f   : > { %1949 = shalt.err (!%p1946_p10)
}
 0x310   : > { %1843 = dma.vmem_to_hbm [thread:$0]  (%p2116_p3), %s1673_s13, 128, %s1675_s1, %s1658_s30  }
 0x311 PF: > { %p1849_p11 = scmp.ge.s32.totalorder %s2016_s12, 2  ;;  %s1686_s26 = sand.u32 1, %s1988_s27  }
 0x312   : > { %s1687_s20 = scalar_lea.sflag [#allocation4], %s1686_s26 }
 0x313   : > { %p1846_p12 = pnand %p1849_p11, %p2125_p8 }
 0x315   : > { %p1847_p13 = pneg %p1846_p12 }
 0x317   : > { %1983 = dma.done.wait (%p1847_p13), %s1687_s20, 128  }
 0x318   : > { %1985 = vsyncadd (%p1847_p13), %s1687_s20, 4294967168  ;;  %s21_s12 = sadd.s32 1, %s2016_s12   ;;  %s3029_s1 = sld [smem:[#allocation6_spill]] }
 0x319   : > { %p18_p0 = scmp.ge.s32.totalorder %s21_s12, 6   ;;  %s3030_s18 = sld [smem:[#allocation7_spill]] }
 0x31a   : > { %s3031_s27 = smov %s1992_s28  ;;  %s3032_s28 = smov %s1996_s29 }
 0x31b   : > { %s3033_s29 = smov %s2134_s23  ;;  %s3034_s30 = smov %s2008_s10 }
 0x31c   : > { %s3035_s9 = smov %s2012_s11  ;;  %20 = sbr.rel (!%p18_p0) target bundleno = 8 (0x8), region = 103 }
 0x31e   : > { %s3036_s10 = smov %s3029_s1 }
 0x31f   : > { %s3037_s11 = smov %s3030_s18 }
 0x321   :  { %1693 = vsyncpa [#allocation4], 1 }
 0x322   :  { %1695 = vsyncpa [#allocation4 + $0x1], 1 }

</bundles_post_ra>
